<compile_context>
chip_gen: v7x
topology: tpu7x:2x2x1
jax: 0.10.0
libtpu: 0.0.40
codegen_flags: <defaults>
</compile_context>

<pallas_src>
import jax
import jax.numpy as jnp
from jax.experimental import pallas as pl
from jax.experimental.pallas import tpu as pltpu


_LAYER_DIMS = [(37, 128), (128, 256), (256, 512), (512, 1024), (1024, 256), (256, 1)]
_K_PAD = 128    # first-layer K padded 37 -> 128
_OUT_PAD = 128  # value-head output lane-padded 1 -> 128 (lane-dense store)


def _round_up(x, m):
    return (x + m - 1) // m * m


# --------------------------------------------------------------------------- #
# Kernel
# --------------------------------------------------------------------------- #
def _mlp_value_kernel(
    x_ref,
    w1_ref, b1_ref,
    w2_ref, b2_ref,
    w3_ref, b3_ref,
    w4_ref, b4_ref,
    wv1_ref, bv1_ref,
    wv2_ref, bv2_ref,
    out_ref,
):
    """One batch tile of the full MLP value head; all weights VMEM-resident."""

    def lin_relu(h, w_ref, b_ref):
        # bf16 x bf16 inputs at native MXU rate; f32 accumulation via
        # preferred_element_type; bias add + ReLU in f32.
        acc = jnp.dot(h.astype(jnp.bfloat16), w_ref[...],
                      preferred_element_type=jnp.float32)
        return jnp.maximum(acc + b_ref[...], 0.0)

    h = x_ref[...]  # already bf16 from the wrapper
    # net: (Linear -> folded eval-BN -> ReLU) x 4 ; Dropout(0.5) is identity in eval.
    h = lin_relu(h, w1_ref, b1_ref)
    h = lin_relu(h, w2_ref, b2_ref)
    h = lin_relu(h, w3_ref, b3_ref)
    h = lin_relu(h, w4_ref, b4_ref)
    # value head: Linear -> ReLU -> Linear (output lane-padded; column 0 is the value).
    v = lin_relu(h, wv1_ref, bv1_ref)
    out = jnp.dot(v.astype(jnp.bfloat16), wv2_ref[...],
                  preferred_element_type=jnp.float32) + bv2_ref[...]
    out_ref[...] = out.astype(out_ref.dtype)


# --------------------------------------------------------------------------- #
# Wrapper
# --------------------------------------------------------------------------- #
def network_forward(x, params, *, block_batch=512):
    """x: [batch, 37] float; params: output of prepare_params(). Returns [batch, 1] f32."""
    batch, in_feat = x.shape

    # bf16 activations => batch tile must be a multiple of 16 (bf16 sublane tile).
    tb = min(block_batch, _round_up(max(batch, 1), 16))
    # v7x megacore: if one tile would cover a large batch, halve it so the
    # "parallel" batch grid has >= 2 steps (one per TensorCore).
    if batch > 256 and _round_up(batch, tb) // tb < 2:
        tb = max(16, _round_up((tb + 1) // 2, 16))
    b_pad = _round_up(batch, tb)

    # Zero-pad batch to the tile and features to the K-padded width; bf16 so the
    # first-layer activation tile is already the MXU input dtype.
    x_p = jnp.zeros((b_pad, _K_PAD), jnp.bfloat16)
    x_p = x_p.at[:batch, :in_feat].set(x.astype(jnp.bfloat16))

    weight_args = (
        params["w1"], params["b1"],
        params["w2"], params["b2"],
        params["w3"], params["b3"],
        params["w4"], params["b4"],
        params["wv1"], params["bv1"],
        params["wv2"], params["bv2"],
    )

    def resident(a):
        # Full-array block, same block index every grid step -> stays VMEM-resident.
        return pl.BlockSpec(a.shape, lambda i: (0, 0))

    grid = (b_pad // tb,)

    flops = 2 * batch * sum(k * n for k, n in _LAYER_DIMS)
    bytes_accessed = (
        sum(int(a.size) * a.dtype.itemsize for a in weight_args)
        + int(x_p.size) * x_p.dtype.itemsize
        + b_pad * _OUT_PAD * 4
    )
    # TODO(synk): for batch >> 10k, pack the value output densely (128 batch values
    # per lane-dense row) instead of the 1->128 lane pad to cut writeback ~128x.

    out = pl.pallas_call(
        _mlp_value_kernel,
        out_shape=jax.ShapeDtypeStruct((b_pad, _OUT_PAD), jnp.float32),
        grid=grid,
        in_specs=[pl.BlockSpec((tb, _K_PAD), lambda i: (i, 0))]
                 + [resident(a) for a in weight_args],
        out_specs=pl.BlockSpec((tb, _OUT_PAD), lambda i: (i, 0)),
        compiler_params=pltpu.CompilerParams(
            dimension_semantics=("parallel",),
            vmem_limit_bytes=32 * 1024 * 1024),
        cost_estimate=pl.CostEstimate(
            flops=flops, transcendentals=0, bytes_accessed=bytes_accessed),
    )(x_p, *weight_args)

    return out[:batch, 0:1]


# --------------------------------------------------------------------------- #
# Parameter construction (PyTorch-equivalent init, then fold/pad/cast for TPU)
# --------------------------------------------------------------------------- #
def _linear_init(key, fan_in, fan_out):
    """nn.Linear default init: U(-1/sqrt(fan_in), 1/sqrt(fan_in)); stored as [in, out]."""
    kw, kb = jax.random.split(key)
    bound = 1.0 / jnp.sqrt(jnp.float32(fan_in))
    w = jax.random.uniform(kw, (fan_in, fan_out), jnp.float32, -bound, bound)
    b = jax.random.uniform(kb, (1, fan_out), jnp.float32, -bound, bound)
    return w, b


def _bn_affine(num_features, eps=1e-5):
    """Eval-mode BatchNorm1d (fresh module defaults) as per-channel scale/shift."""
    gamma = jnp.ones((1, num_features), jnp.float32)
    beta = jnp.zeros((1, num_features), jnp.float32)
    running_mean = jnp.zeros((1, num_features), jnp.float32)
    running_var = jnp.ones((1, num_features), jnp.float32)
    scale = gamma / jnp.sqrt(running_var + eps)
    shift = beta - running_mean * scale
    return scale, shift


def init_raw_params(key):
    keys = jax.random.split(key, 6)
    p = {}
    p["w1"], p["b1"] = _linear_init(keys[0], 37, 128)
    p["s1"], p["t1"] = _bn_affine(128)
    p["w2"], p["b2"] = _linear_init(keys[1], 128, 256)
    p["s2"], p["t2"] = _bn_affine(256)
    p["w3"], p["b3"] = _linear_init(keys[2], 256, 512)
    p["s3"], p["t3"] = _bn_affine(512)
    p["w4"], p["b4"] = _linear_init(keys[3], 512, 1024)
    p["s4"], p["t4"] = _bn_affine(1024)
    p["wv1"], p["bv1"] = _linear_init(keys[4], 1024, 256)
    p["wv2"], p["bv2"] = _linear_init(keys[5], 256, 1)
    return p


def prepare_params(raw, weight_dtype=jnp.bfloat16):
    """Fold eval-BN into Linear, pad first-layer K and final output lanes, cast weights."""
    def fold(w, b, s, t):
        w_f = (w * s).astype(weight_dtype)          # column-wise scale
        b_f = (b * s + t).astype(jnp.float32)
        return w_f, b_f

    p = {}
    w1, b1 = fold(raw["w1"], raw["b1"], raw["s1"], raw["t1"])
    w1p = jnp.zeros((_K_PAD, 128), w1.dtype).at[:37, :].set(w1)   # K-pad 37 -> 128
    p["w1"], p["b1"] = w1p, b1
    p["w2"], p["b2"] = fold(raw["w2"], raw["b2"], raw["s2"], raw["t2"])
    p["w3"], p["b3"] = fold(raw["w3"], raw["b3"], raw["s3"], raw["t3"])
    p["w4"], p["b4"] = fold(raw["w4"], raw["b4"], raw["s4"], raw["t4"])
    # value head (no BN)
    p["wv1"] = raw["wv1"].astype(weight_dtype)
    p["bv1"] = raw["bv1"].astype(jnp.float32)
    wv2 = jnp.zeros((256, _OUT_PAD), jnp.float32).at[:, 0:1].set(raw["wv2"])
    bv2 = jnp.zeros((1, _OUT_PAD), jnp.float32).at[:, 0:1].set(raw["bv2"])
    p["wv2"] = wv2.astype(weight_dtype)
    p["bv2"] = bv2
    return p


# --------------------------------------------------------------------------- #
# Pure-JAX reference on the exact same prepared params (same bf16/f32 mix)
# --------------------------------------------------------------------------- #
def _reference_forward(x, p):
    batch, in_feat = x.shape
    h = jnp.zeros((batch, _K_PAD), jnp.bfloat16).at[:, :in_feat].set(
        x.astype(jnp.bfloat16))

    def lin_relu(h, w, b):
        acc = jnp.dot(h.astype(jnp.bfloat16), w, preferred_element_type=jnp.float32)
        return jnp.maximum(acc + b, 0.0)

    h = lin_relu(h, p["w1"], p["b1"])
    h = lin_relu(h, p["w2"], p["b2"])
    h = lin_relu(h, p["w3"], p["b3"])
    h = lin_relu(h, p["w4"], p["b4"])
    v = lin_relu(h, p["wv1"], p["bv1"])
    out = jnp.dot(v.astype(jnp.bfloat16), p["wv2"],
                  preferred_element_type=jnp.float32) + p["bv2"]
    return out[:, 0:1]


if __name__ == "__main__":
    key = jax.random.PRNGKey(0)
    kx, kp = jax.random.split(key)

    batch = 8
    x = jax.random.normal(kx, (batch, 37), jnp.float32)
    raw = init_raw_params(kp)
    params = prepare_params(raw)

    out = network_forward(x, params)
    out = jax.block_until_ready(out)

    ref = _reference_forward(x, params)
    assert out.shape == (batch, 1), out.shape
    # Both paths use bf16 weights/activations with f32 accumulation; tolerance
    # covers MXU vs XLA-dot rounding differences.
    assert jnp.allclose(out, ref, atol=2e-2, rtol=2e-2), (out, ref)

    print("KERNEL_OK")
</pallas_src>

<mosaic_0001>
module attributes {stable_mosaic.version = 11 : i64} {
  func.func @_mlp_value_kernel(%arg0: i32, %arg1: memref<16x128xbf16, #tpu.memory_space<vmem>>, %arg2: memref<128x128xbf16, #tpu.memory_space<vmem>>, %arg3: memref<1x128xf32, #tpu.memory_space<vmem>>, %arg4: memref<128x256xbf16, #tpu.memory_space<vmem>>, %arg5: memref<1x256xf32, #tpu.memory_space<vmem>>, %arg6: memref<256x512xbf16, #tpu.memory_space<vmem>>, %arg7: memref<1x512xf32, #tpu.memory_space<vmem>>, %arg8: memref<512x1024xbf16, #tpu.memory_space<vmem>>, %arg9: memref<1x1024xf32, #tpu.memory_space<vmem>>, %arg10: memref<1024x256xbf16, #tpu.memory_space<vmem>>, %arg11: memref<1x256xf32, #tpu.memory_space<vmem>>, %arg12: memref<256x128xbf16, #tpu.memory_space<vmem>>, %arg13: memref<1x128xf32, #tpu.memory_space<vmem>>, %arg14: memref<16x128xf32, #tpu.memory_space<vmem>>) attributes {dimension_semantics = [#tpu.dimension_semantics<parallel>], iteration_bounds = array<i64: 1>, scalar_prefetch = 0 : i64, scratch_operands = 0 : i64, tpu.core_type = #tpu.core_type<tc>, window_params = [{transform_indices = @transform_0, window_bounds = array<i64: 16, 128>}, {pipeline_mode = #tpu.pipeline_mode<synchronous>, transform_indices = @transform_1, window_bounds = array<i64: 128, 128>}, {pipeline_mode = #tpu.pipeline_mode<synchronous>, transform_indices = @transform_2, window_bounds = array<i64: 1, 128>}, {pipeline_mode = #tpu.pipeline_mode<synchronous>, transform_indices = @transform_3, window_bounds = array<i64: 128, 256>}, {pipeline_mode = #tpu.pipeline_mode<synchronous>, transform_indices = @transform_4, window_bounds = array<i64: 1, 256>}, {pipeline_mode = #tpu.pipeline_mode<synchronous>, transform_indices = @transform_5, window_bounds = array<i64: 256, 512>}, {pipeline_mode = #tpu.pipeline_mode<synchronous>, transform_indices = @transform_6, window_bounds = array<i64: 1, 512>}, {pipeline_mode = #tpu.pipeline_mode<synchronous>, transform_indices = @transform_7, window_bounds = array<i64: 512, 1024>}, {pipeline_mode = #tpu.pipeline_mode<synchronous>, transform_indices = @transform_8, window_bounds = array<i64: 1, 1024>}, {pipeline_mode = #tpu.pipeline_mode<synchronous>, transform_indices = @transform_9, window_bounds = array<i64: 1024, 256>}, {pipeline_mode = #tpu.pipeline_mode<synchronous>, transform_indices = @transform_10, window_bounds = array<i64: 1, 256>}, {pipeline_mode = #tpu.pipeline_mode<synchronous>, transform_indices = @transform_11, window_bounds = array<i64: 256, 128>}, {pipeline_mode = #tpu.pipeline_mode<synchronous>, transform_indices = @transform_12, window_bounds = array<i64: 1, 128>}, {transform_indices = @transform_13, window_bounds = array<i64: 16, 128>}]} {
    %c0 = arith.constant 0 : index
    %c0_0 = arith.constant 0 : index
    %0 = vector.load %arg1[%c0, %c0_0] : memref<16x128xbf16, #tpu.memory_space<vmem>>, vector<16x128xbf16>
    %c0_1 = arith.constant 0 : index
    %c0_2 = arith.constant 0 : index
    %1 = vector.load %arg2[%c0_1, %c0_2] : memref<128x128xbf16, #tpu.memory_space<vmem>>, vector<128x128xbf16>
    %cst = arith.constant dense<0.000000e+00> : vector<16x128xf32>
    %2 = tpu.matmul %0, %1, %cst {dimension_numbers = #tpu.dot_dimension_numbers<[1], [0], [0], [1], [0, 0, 1, 1], [], []>} : vector<16x128xbf16>, vector<128x128xbf16>, vector<16x128xf32> -> vector<16x128xf32>
    %c0_3 = arith.constant 0 : index
    %c0_4 = arith.constant 0 : index
    %3 = vector.load %arg3[%c0_3, %c0_4] : memref<1x128xf32, #tpu.memory_space<vmem>>, vector<1x128xf32>
    %4 = vector.broadcast %3 : vector<1x128xf32> to vector<16x128xf32>
    %5 = arith.addf %2, %4 : vector<16x128xf32>
    %cst_5 = arith.constant 0.000000e+00 : f32
    %6 = vector.broadcast %cst_5 : f32 to vector<16x128xf32>
    %7 = arith.maximumf %5, %6 : vector<16x128xf32>
    %8 = arith.truncf %7 : vector<16x128xf32> to vector<16x128xbf16>
    %c0_6 = arith.constant 0 : index
    %c0_7 = arith.constant 0 : index
    %9 = vector.load %arg4[%c0_6, %c0_7] : memref<128x256xbf16, #tpu.memory_space<vmem>>, vector<128x256xbf16>
    %cst_8 = arith.constant dense<0.000000e+00> : vector<16x256xf32>
    %10 = tpu.matmul %8, %9, %cst_8 {dimension_numbers = #tpu.dot_dimension_numbers<[1], [0], [0], [1], [0, 0, 1, 1], [], []>} : vector<16x128xbf16>, vector<128x256xbf16>, vector<16x256xf32> -> vector<16x256xf32>
    %c0_9 = arith.constant 0 : index
    %c0_10 = arith.constant 0 : index
    %11 = vector.load %arg5[%c0_9, %c0_10] : memref<1x256xf32, #tpu.memory_space<vmem>>, vector<1x256xf32>
    %12 = vector.broadcast %11 : vector<1x256xf32> to vector<16x256xf32>
    %13 = arith.addf %10, %12 : vector<16x256xf32>
    %cst_11 = arith.constant 0.000000e+00 : f32
    %14 = vector.broadcast %cst_11 : f32 to vector<16x256xf32>
    %15 = arith.maximumf %13, %14 : vector<16x256xf32>
    %16 = arith.truncf %15 : vector<16x256xf32> to vector<16x256xbf16>
    %c0_12 = arith.constant 0 : index
    %c0_13 = arith.constant 0 : index
    %17 = vector.load %arg6[%c0_12, %c0_13] : memref<256x512xbf16, #tpu.memory_space<vmem>>, vector<256x512xbf16>
    %cst_14 = arith.constant dense<0.000000e+00> : vector<16x512xf32>
    %18 = tpu.matmul %16, %17, %cst_14 {dimension_numbers = #tpu.dot_dimension_numbers<[1], [0], [0], [1], [0, 0, 1, 1], [], []>} : vector<16x256xbf16>, vector<256x512xbf16>, vector<16x512xf32> -> vector<16x512xf32>
    %c0_15 = arith.constant 0 : index
    %c0_16 = arith.constant 0 : index
    %19 = vector.load %arg7[%c0_15, %c0_16] : memref<1x512xf32, #tpu.memory_space<vmem>>, vector<1x512xf32>
    %20 = vector.broadcast %19 : vector<1x512xf32> to vector<16x512xf32>
    %21 = arith.addf %18, %20 : vector<16x512xf32>
    %cst_17 = arith.constant 0.000000e+00 : f32
    %22 = vector.broadcast %cst_17 : f32 to vector<16x512xf32>
    %23 = arith.maximumf %21, %22 : vector<16x512xf32>
    %24 = arith.truncf %23 : vector<16x512xf32> to vector<16x512xbf16>
    %c0_18 = arith.constant 0 : index
    %c0_19 = arith.constant 0 : index
    %25 = vector.load %arg8[%c0_18, %c0_19] : memref<512x1024xbf16, #tpu.memory_space<vmem>>, vector<512x1024xbf16>
    %cst_20 = arith.constant dense<0.000000e+00> : vector<16x1024xf32>
    %26 = tpu.matmul %24, %25, %cst_20 {dimension_numbers = #tpu.dot_dimension_numbers<[1], [0], [0], [1], [0, 0, 1, 1], [], []>} : vector<16x512xbf16>, vector<512x1024xbf16>, vector<16x1024xf32> -> vector<16x1024xf32>
    %c0_21 = arith.constant 0 : index
    %c0_22 = arith.constant 0 : index
    %27 = vector.load %arg9[%c0_21, %c0_22] : memref<1x1024xf32, #tpu.memory_space<vmem>>, vector<1x1024xf32>
    %28 = vector.broadcast %27 : vector<1x1024xf32> to vector<16x1024xf32>
    %29 = arith.addf %26, %28 : vector<16x1024xf32>
    %cst_23 = arith.constant 0.000000e+00 : f32
    %30 = vector.broadcast %cst_23 : f32 to vector<16x1024xf32>
    %31 = arith.maximumf %29, %30 : vector<16x1024xf32>
    %32 = arith.truncf %31 : vector<16x1024xf32> to vector<16x1024xbf16>
    %c0_24 = arith.constant 0 : index
    %c0_25 = arith.constant 0 : index
    %33 = vector.load %arg10[%c0_24, %c0_25] : memref<1024x256xbf16, #tpu.memory_space<vmem>>, vector<1024x256xbf16>
    %cst_26 = arith.constant dense<0.000000e+00> : vector<16x256xf32>
    %34 = tpu.matmul %32, %33, %cst_26 {dimension_numbers = #tpu.dot_dimension_numbers<[1], [0], [0], [1], [0, 0, 1, 1], [], []>} : vector<16x1024xbf16>, vector<1024x256xbf16>, vector<16x256xf32> -> vector<16x256xf32>
    %c0_27 = arith.constant 0 : index
    %c0_28 = arith.constant 0 : index
    %35 = vector.load %arg11[%c0_27, %c0_28] : memref<1x256xf32, #tpu.memory_space<vmem>>, vector<1x256xf32>
    %36 = vector.broadcast %35 : vector<1x256xf32> to vector<16x256xf32>
    %37 = arith.addf %34, %36 : vector<16x256xf32>
    %cst_29 = arith.constant 0.000000e+00 : f32
    %38 = vector.broadcast %cst_29 : f32 to vector<16x256xf32>
    %39 = arith.maximumf %37, %38 : vector<16x256xf32>
    %40 = arith.truncf %39 : vector<16x256xf32> to vector<16x256xbf16>
    %c0_30 = arith.constant 0 : index
    %c0_31 = arith.constant 0 : index
    %41 = vector.load %arg12[%c0_30, %c0_31] : memref<256x128xbf16, #tpu.memory_space<vmem>>, vector<256x128xbf16>
    %cst_32 = arith.constant dense<0.000000e+00> : vector<16x128xf32>
    %42 = tpu.matmul %40, %41, %cst_32 {dimension_numbers = #tpu.dot_dimension_numbers<[1], [0], [0], [1], [0, 0, 1, 1], [], []>} : vector<16x256xbf16>, vector<256x128xbf16>, vector<16x128xf32> -> vector<16x128xf32>
    %c0_33 = arith.constant 0 : index
    %c0_34 = arith.constant 0 : index
    %43 = vector.load %arg13[%c0_33, %c0_34] : memref<1x128xf32, #tpu.memory_space<vmem>>, vector<1x128xf32>
    %44 = vector.broadcast %43 : vector<1x128xf32> to vector<16x128xf32>
    %45 = arith.addf %42, %44 : vector<16x128xf32>
    %c0_35 = arith.constant 0 : index
    %c0_36 = arith.constant 0 : index
    %46 = vector.load %arg14[%c0_35, %c0_36] : memref<16x128xf32, #tpu.memory_space<vmem>>, vector<16x128xf32>
    tpu.vector_store %arg14[%c0_35, %c0_36], %45 {strides = array<i32>} : memref<16x128xf32, #tpu.memory_space<vmem>>, vector<16x128xf32>,
    return
  }
  func.func @transform_0(%arg0: i32) -> (i32, i32) {
    %c0_i32 = arith.constant 0 : i32
    %c0_i32_0 = arith.constant 0 : i32
    return %arg0, %c0_i32 : i32, i32
  }
  func.func @transform_1(%arg0: i32) -> (i32, i32) {
    %c0_i32 = arith.constant 0 : i32
    %c0_i32_0 = arith.constant 0 : i32
    %c0_i32_1 = arith.constant 0 : i32
    return %c0_i32, %c0_i32_0 : i32, i32
  }
  func.func @transform_2(%arg0: i32) -> (i32, i32) {
    %c0_i32 = arith.constant 0 : i32
    %c0_i32_0 = arith.constant 0 : i32
    %c0_i32_1 = arith.constant 0 : i32
    return %c0_i32, %c0_i32_0 : i32, i32
  }
  func.func @transform_3(%arg0: i32) -> (i32, i32) {
    %c0_i32 = arith.constant 0 : i32
    %c0_i32_0 = arith.constant 0 : i32
    %c0_i32_1 = arith.constant 0 : i32
    return %c0_i32, %c0_i32_0 : i32, i32
  }
  func.func @transform_4(%arg0: i32) -> (i32, i32) {
    %c0_i32 = arith.constant 0 : i32
    %c0_i32_0 = arith.constant 0 : i32
    %c0_i32_1 = arith.constant 0 : i32
    return %c0_i32, %c0_i32_0 : i32, i32
  }
  func.func @transform_5(%arg0: i32) -> (i32, i32) {
    %c0_i32 = arith.constant 0 : i32
    %c0_i32_0 = arith.constant 0 : i32
    %c0_i32_1 = arith.constant 0 : i32
    return %c0_i32, %c0_i32_0 : i32, i32
  }
  func.func @transform_6(%arg0: i32) -> (i32, i32) {
    %c0_i32 = arith.constant 0 : i32
    %c0_i32_0 = arith.constant 0 : i32
    %c0_i32_1 = arith.constant 0 : i32
    return %c0_i32, %c0_i32_0 : i32, i32
  }
  func.func @transform_7(%arg0: i32) -> (i32, i32) {
    %c0_i32 = arith.constant 0 : i32
    %c0_i32_0 = arith.constant 0 : i32
    %c0_i32_1 = arith.constant 0 : i32
    return %c0_i32, %c0_i32_0 : i32, i32
  }
  func.func @transform_8(%arg0: i32) -> (i32, i32) {
    %c0_i32 = arith.constant 0 : i32
    %c0_i32_0 = arith.constant 0 : i32
    %c0_i32_1 = arith.constant 0 : i32
    return %c0_i32, %c0_i32_0 : i32, i32
  }
  func.func @transform_9(%arg0: i32) -> (i32, i32) {
    %c0_i32 = arith.constant 0 : i32
    %c0_i32_0 = arith.constant 0 : i32
    %c0_i32_1 = arith.constant 0 : i32
    return %c0_i32, %c0_i32_0 : i32, i32
  }
  func.func @transform_10(%arg0: i32) -> (i32, i32) {
    %c0_i32 = arith.constant 0 : i32
    %c0_i32_0 = arith.constant 0 : i32
    %c0_i32_1 = arith.constant 0 : i32
    return %c0_i32, %c0_i32_0 : i32, i32
  }
  func.func @transform_11(%arg0: i32) -> (i32, i32) {
    %c0_i32 = arith.constant 0 : i32
    %c0_i32_0 = arith.constant 0 : i32
    %c0_i32_1 = arith.constant 0 : i32
    return %c0_i32, %c0_i32_0 : i32, i32
  }
  func.func @transform_12(%arg0: i32) -> (i32, i32) {
    %c0_i32 = arith.constant 0 : i32
    %c0_i32_0 = arith.constant 0 : i32
    %c0_i32_1 = arith.constant 0 : i32
    return %c0_i32, %c0_i32_0 : i32, i32
  }
  func.func @transform_13(%arg0: i32) -> (i32, i32) {
    %c0_i32 = arith.constant 0 : i32
    %c0_i32_0 = arith.constant 0 : i32
    return %arg0, %c0_i32 : i32, i32
  }
}

</mosaic_0001>

<bundles_post_ra>
// kernel: tpu_custom_call.1
= control target key start
LH: loop header
LB: loop body
LE: loop exit
PB: predicated region body
PF: predicated region fallthrough
CT: control target
= control target key end

     0   :  { %18 = vsyncpa [#allocation3], 0  ;;  %s5503_s0 = inlined_call_operand.hbm [shape: bf16[16,128], index: 0, kind: input, shape index: {}]   ;;  %s5504_s1 = inlined_call_operand.hbm [shape: bf16[128,128], index: 1, kind: input, shape index: {}]   ;;  %s5505_s2 = inlined_call_operand.vmem [shape: f32[1,128], index: 2, kind: input, shape index: {}]   ;;  %s5506_s3 = inlined_call_operand.hbm [shape: bf16[128,256], index: 3, kind: input, shape index: {}]   ;;  %s5507_s4 = inlined_call_operand.vmem [shape: f32[1,256], index: 4, kind: input, shape index: {}]   ;;  %s5508_s5 = inlined_call_operand.hbm [shape: bf16[256,512], index: 5, kind: input, shape index: {}]   ;;  %s5509_s6 = inlined_call_operand.vmem [shape: f32[1,512], index: 6, kind: input, shape index: {}]   ;;  %s5510_s7 = inlined_call_operand.hbm [shape: bf16[512,1024], index: 7, kind: input, shape index: {}]   ;;  %s5511_s8 = inlined_call_operand.vmem [shape: f32[1,1024], index: 8, kind: input, shape index: {}]   ;;  %s5512_s9 = inlined_call_operand.hbm [shape: bf16[1024,256], index: 9, kind: input, shape index: {}]   ;;  %s5513_s10 = inlined_call_operand.vmem [shape: f32[1,256], index: 10, kind: input, shape index: {}]   ;;  %s5514_s11 = inlined_call_operand.hbm [shape: bf16[256,128], index: 11, kind: input, shape index: {}]   ;;  %s5515_s12 = inlined_call_operand.vmem [shape: f32[1,128], index: 12, kind: input, shape index: {}]   ;;  %s5516_s13 = inlined_call_operand.hbm [shape: f32[16,128], index: 13, kind: output, shape index: {}]  }
   0x1   :  { %19 = vsyncpa [#allocation6], 0 }
   0x2   :  { %20 = vsyncpa [#allocation9], 0 }
   0x3   :  { %21 = vsyncpa [#allocation12], 0 }
   0x4   :  { %22 = vsyncpa [#allocation4], 0  ;;  %s5159_s25 = smov [#allocation5]   ;;  %s5160_s27 = smov [#allocation8]  }
   0x5   :  { %s40_s26 = sshll.u32 %s5159_s25, 4  ;;  %s68_s28 = sshll.u32 %s5160_s27, 4  ;;  %s41_s26 = int_to_ptr.vmem [resolvable:$true] %s40_s26  ;;  %s5248_s28 = int_to_ptr.vmem [resolvable:$true] %s68_s28 }
   0x6   :  { %s4973_s14 = scalar_lea.hbm %s5504_s1, 1024 }
   0x7   :  { %p4974_p0 = scmp.ne.s32.totalorder %s5504_s1, %s4973_s14  ;;  %p4977_p1 = scmp.lt.u32.totalorder %s4973_s14, %s5504_s1 }
   0x9   :  { %p4979_p2 = pnand %p4977_p1, %p4974_p0 }
   0xb   :  { %4982 = shalt.err (!%p4979_p2)
}
   0xc   :  { %s4983_s19 = scalar_lea.vmem %s41_s26, 1024  ;;  %p4988_p4 = scmp.lt.s32.totalorder %s41_s26, %s41_s26 }
   0xd   :  { %p4984_p3 = scmp.ne.s32.totalorder %s41_s26, %s4983_s19  ;;  %p4989_p5 = scmp.lt.s32.totalorder %s4983_s19, %s4983_s19 }
   0xf   :  { %p4990_p6 = por %p4989_p5, %p4988_p4 }
  0x11   :  { %p4991_p7 = pnand %p4990_p6, %p4984_p3 }
  0x13   :  { %4994 = shalt.err (!%p4991_p7)
}
  0x14   :  { %s5161_s20 = smov 64   ;;  %s5162_s21 = smov 4  }
  0x15   :  { %46 = dma.hbm_to_vmem [thread:$0]  %s5504_s1, 1024, %s41_s26, [#allocation6], %s5161_s20, %s5161_s20, %s5162_s21  }
  0x16   :  { %s4995_s27 = scalar_lea.hbm %s5508_s5, 8192 }
  0x17   :  { %p4996_p8 = scmp.ne.s32.totalorder %s5508_s5, %s4995_s27  ;;  %p4999_p9 = scmp.lt.u32.totalorder %s4995_s27, %s5508_s5 }
  0x19   :  { %p5001_p10 = pnand %p4999_p9, %p4996_p8 }
  0x1b   :  { %5004 = shalt.err (!%p5001_p10)
}
  0x1c   :  { %s5005_s16 = scalar_lea.vmem %s5248_s28, 8192  ;;  %p5010_p12 = scmp.lt.s32.totalorder %s5248_s28, %s5248_s28 }
  0x1d   :  { %p5006_p11 = scmp.ne.s32.totalorder %s5248_s28, %s5005_s16  ;;  %p5011_p13 = scmp.lt.s32.totalorder %s5005_s16, %s5005_s16 }
  0x1f   :  { %p5012_p0 = por %p5011_p13, %p5010_p12 }
  0x21   :  { %p5013_p1 = pnand %p5012_p0, %p5006_p11 }
  0x23   :  { %5016 = shalt.err (!%p5013_p1)
}
  0x24   :  { %s5163_s1 = smov 256   ;;  %s5164_s26 = smov 16  }
  0x25   :  { %74 = dma.hbm_to_vmem [thread:$0]  %s5508_s5, 8192, %s5248_s28, [#allocation9], %s5163_s1, %s5163_s1, %s5164_s26  }
  0x26   :  { %s5165_s19 = smov [#allocation11]   ;;  %s5166_s23 = smov [#allocation2]  }
  0x27   :  { %s96_s22 = sshll.u32 %s5165_s19, 4  ;;  %s28_s24 = sshll.u32 %s5166_s23, 4  ;;  %s97_s22 = int_to_ptr.vmem [resolvable:$true] %s96_s22  ;;  %s5282_s24 = int_to_ptr.vmem [resolvable:$true] %s28_s24 }
  0x28   :  { %s5017_s29 = scalar_lea.hbm %s5512_s9, 16384 }
  0x29   :  { %p5018_p2 = scmp.ne.s32.totalorder %s5512_s9, %s5017_s29  ;;  %p5021_p3 = scmp.lt.u32.totalorder %s5017_s29, %s5512_s9 }
  0x2b   :  { %p5023_p4 = pnand %p5021_p3, %p5018_p2 }
  0x2d   :  { %5026 = shalt.err (!%p5023_p4)
}
  0x2e   :  { %s5027_s5 = scalar_lea.vmem %s97_s22, 16384  ;;  %p5032_p6 = scmp.lt.s32.totalorder %s97_s22, %s97_s22 }
  0x2f   :  { %p5028_p5 = scmp.ne.s32.totalorder %s97_s22, %s5027_s5  ;;  %p5033_p7 = scmp.lt.s32.totalorder %s5027_s5, %s5027_s5 }
  0x31   :  { %p5034_p8 = por %p5033_p7, %p5032_p6 }
  0x33   :  { %p5035_p9 = pnand %p5034_p8, %p5028_p5 }
  0x35   :  { %5038 = shalt.err (!%p5035_p9)
}
  0x36   :  { %s5167_s28 = smov 128   ;;  %s5168_s1 = smov 8  }
  0x37   :  { %102 = dma.hbm_to_vmem [thread:$0]  %s5512_s9, 16384, %s97_s22, [#allocation12], %s5167_s28, %s5167_s28, %s5168_s1  }
  0x38   :  { %s5039_s23 = scalar_lea.hbm %s5503_s0, 128 }
  0x39   :  { %p5040_p10 = scmp.ne.s32.totalorder %s5503_s0, %s5039_s23  ;;  %p5043_p11 = scmp.lt.u32.totalorder %s5039_s23, %s5503_s0 }
  0x3b   :  { %p5045_p12 = pnand %p5043_p11, %p5040_p10 }
  0x3d   :  { %5048 = shalt.err (!%p5045_p12)
}
  0x3e   :  { %s5049_s14 = scalar_lea.vmem %s5282_s24, 128  ;;  %p5054_p0 = scmp.lt.s32.totalorder %s5282_s24, %s5282_s24 }
  0x3f   :  { %p5050_p13 = scmp.ne.s32.totalorder %s5282_s24, %s5049_s14  ;;  %p5055_p1 = scmp.lt.s32.totalorder %s5049_s14, %s5049_s14 }
  0x41   :  { %p5056_p2 = por %p5055_p1, %p5054_p0 }
  0x43   :  { %p5057_p3 = pnand %p5056_p2, %p5050_p13 }
  0x45   :  { %5060 = shalt.err (!%p5057_p3)
}
  0x46   :  { %34 = dma.hbm_to_vmem [thread:$0]  %s5503_s0, 128, %s5282_s24, [#allocation3], %s5161_s20, %s5161_s20, %s5162_s21  }
  0x47   :  { %s5169_s15 = smov [#allocation7]   ;;  %s5170_s5 = smov [#allocation10]  }
  0x48   :  { %s54_s16 = sshll.u32 %s5169_s15, 4  ;;  %s82_s26 = sshll.u32 %s5170_s5, 4  ;;  %s55_s16 = int_to_ptr.vmem [resolvable:$true] %s54_s16  ;;  %s5319_s26 = int_to_ptr.vmem [resolvable:$true] %s82_s26 }
  0x49   :  { %s5061_s19 = scalar_lea.hbm %s5506_s3, 2048 }
  0x4a   :  { %p5062_p4 = scmp.ne.s32.totalorder %s5506_s3, %s5061_s19  ;;  %p5065_p5 = scmp.lt.u32.totalorder %s5061_s19, %s5506_s3 }
  0x4c   :  { %p5067_p6 = pnand %p5065_p5, %p5062_p4 }
  0x4e   :  { %5070 = shalt.err (!%p5067_p6)
}
  0x4f   :  { %s5071_s0 = scalar_lea.vmem %s55_s16, 2048  ;;  %p5076_p8 = scmp.lt.s32.totalorder %s55_s16, %s55_s16 }
  0x50   :  { %p5072_p7 = scmp.ne.s32.totalorder %s55_s16, %s5071_s0  ;;  %p5077_p9 = scmp.lt.s32.totalorder %s5071_s0, %s5071_s0 }
  0x52   :  { %p5078_p10 = por %p5077_p9, %p5076_p8 }
  0x54   :  { %p5079_p11 = pnand %p5078_p10, %p5072_p7 }
  0x56   :  { %5082 = shalt.err (!%p5079_p11)
}
  0x57   :  { %60 = dma.hbm_to_vmem [thread:$0]  %s5506_s3, 2048, %s55_s16, [#allocation6], %s5167_s28, %s5167_s28, %s5168_s1  }
  0x58   :  { %s5083_s22 = scalar_lea.hbm %s5510_s7, 32768 }
  0x59   :  { %p5084_p12 = scmp.ne.s32.totalorder %s5510_s7, %s5083_s22  ;;  %p5087_p13 = scmp.lt.u32.totalorder %s5083_s22, %s5510_s7 }
  0x5b   :  { %p5089_p0 = pnand %p5087_p13, %p5084_p12 }
  0x5d   :  { %5092 = shalt.err (!%p5089_p0)
}
  0x5e   :  { %s5093_s19 = scalar_lea.vmem %s5319_s26, 32768  ;;  %p5098_p2 = scmp.lt.s32.totalorder %s5319_s26, %s5319_s26 }
  0x5f   :  { %p5094_p1 = scmp.ne.s32.totalorder %s5319_s26, %s5093_s19  ;;  %p5099_p3 = scmp.lt.s32.totalorder %s5093_s19, %s5093_s19 }
  0x61   :  { %p5100_p4 = por %p5099_p3, %p5098_p2 }
  0x63   :  { %p5101_p5 = pnand %p5100_p4, %p5094_p1 }
  0x65   :  { %5104 = shalt.err (!%p5101_p5)
}
  0x66   :  { %s5171_s3 = smov 512   ;;  %s5172_s16 = smov 32  }
  0x67   :  { %88 = dma.hbm_to_vmem [thread:$0]  %s5510_s7, 32768, %s5319_s26, [#allocation9], %s5171_s3, %s5171_s3, %s5172_s16  }
  0x68   :  { %s5173_s27 = smov [#allocation13]   ;;  %s5105_s30 = scalar_lea.hbm %s5514_s11, 2048 }
  0x69   :  { %s110_s29 = sshll.u32 %s5173_s27, 4  ;;  %p5106_p6 = scmp.ne.s32.totalorder %s5514_s11, %s5105_s30  ;;  %s111_s29 = int_to_ptr.vmem [resolvable:$true] %s110_s29 }
  0x6a   :  { %p5109_p7 = scmp.lt.u32.totalorder %s5105_s30, %s5514_s11 }
  0x6c   :  { %p5111_p8 = pnand %p5109_p7, %p5106_p6 }
  0x6e   :  { %5114 = shalt.err (!%p5111_p8)
}
  0x6f   :  { %s5115_s5 = scalar_lea.vmem %s111_s29, 2048  ;;  %p5120_p10 = scmp.lt.s32.totalorder %s111_s29, %s111_s29 }
  0x70   :  { %p5116_p9 = scmp.ne.s32.totalorder %s111_s29, %s5115_s5  ;;  %p5121_p11 = scmp.lt.s32.totalorder %s5115_s5, %s5115_s5 }
  0x72   :  { %p5122_p12 = por %p5121_p11, %p5120_p10 }
  0x74   :  { %p5123_p13 = pnand %p5122_p12, %p5116_p9 }
  0x76   :  { %5126 = shalt.err (!%p5123_p13)
}
  0x77   :  { %116 = dma.hbm_to_vmem [thread:$0]  %s5514_s11, 2048, %s111_s29, [#allocation12], %s5161_s20, %s5161_s20, %s5162_s21  }
  0x78   :  { %5149 = dma.done.wait [#allocation3], 128  }
  0x79   :  { %5150 = vsyncadd [#allocation3], 4294967168 }
  0x7a   :  { %5151 = dma.done.wait [#allocation6], 3072  }
  0x7b   :  { %5152 = vsyncadd [#allocation6], 4294964224 }
  0x7c   :  { %5153 = dma.done.wait [#allocation9], 40960  }
  0x7d   :  { %5154 = vsyncadd [#allocation9], 4294926336 }
  0x7e   :  { %5155 = dma.done.wait [#allocation12], 18432  }
  0x7f   :  { %5156 = vsyncadd [#allocation12], 4294948864  ;;  %v5174_v0 = vmov 0.0   ;;  %vm5175_vm0 = vmmov 0   ;;  %v4636_v1 = vld [vmem:[#allocation5] sm:$0xff]   ;;  %v4637_v2 = vld [vmem:[#allocation5 + $0x8] sm:$0xff]  }
  0x80   :  { %4549 = vmatprep.subr.bf16.mxu1 %v5174_v0  ;;  %4565 = vmatprep.mubr.msk.bf16.mxu1 %vm5175_vm0, %v5174_v0  ;;  %v4638_v3 = vld [vmem:[#allocation5 + $0x10] sm:$0xff]   ;;  %v4639_v4 = vld [vmem:[#allocation5 + $0x18] sm:$0xff]   ;;  %v4640_v5 = vld [vmem:[#allocation5 + $0x20] sm:$0xff]   ;;  %v5176_v26 = vmov 0   ;;  %s5177_s16 = smov [#allocation14]  }
  0x81   :  { %4550 = vmatpush3.bf16.msra.mxu1 %v4636_v1  ;;  %v4641_v6 = vld [vmem:[#allocation5 + $0x28] sm:$0xff]   ;;  %v4642_v7 = vld [vmem:[#allocation5 + $0x30] sm:$0xff]   ;;  %v4643_v8 = vld [vmem:[#allocation5 + $0x38] sm:$0xff]   ;;  %s4012_s23 = sshll.u32 %s5177_s16, 4  ;;  %s4013_s23 = int_to_ptr.vmem [resolvable:$true] %s4012_s23 }
  0x82   :  { %4551 = vmatprep.subr.bf16.mxu1 %v5174_v0  ;;  %v4647_v9 = vld [vmem:[#allocation7 + $0x4] ss:$8 sps:$4 sm:$0xff]   ;;  %v4644_v10 = vld [vmem:[#allocation2] sm:$0xff]   ;;  %v4645_v11 = vld [vmem:[#allocation7] ss:$8 sps:$4 sm:$0xff]   ;;  %s5127_s25 = scalar_lea.vmem %s4013_s23, 256  ;;  %p5132_p1 = scmp.lt.s32.totalorder %s4013_s23, %s4013_s23 }
  0x83   :  { %v4650_v12 = vld [vmem:[#allocation7 + $0x14] ss:$8 sps:$4 sm:$0xff]   ;;  %v4648_v13 = vld [vmem:[#allocation7 + $0x10] ss:$8 sps:$4 sm:$0xff]   ;;  %v4653_v14 = vld [vmem:[#allocation7 + $0x24] ss:$8 sps:$4 sm:$0xff]   ;;  %p5128_p0 = scmp.ne.s32.totalorder %s4013_s23, %s5127_s25  ;;  %p5133_p2 = scmp.lt.s32.totalorder %s5127_s25, %s5127_s25 }
  0x84   :  { %v4651_v15 = vld [vmem:[#allocation7 + $0x20] ss:$8 sps:$4 sm:$0xff]   ;;  %v4656_v16 = vld [vmem:[#allocation7 + $0x34] ss:$8 sps:$4 sm:$0xff]   ;;  %v4654_v17 = vld [vmem:[#allocation7 + $0x30] ss:$8 sps:$4 sm:$0xff]  }
  0x85   :  { %4552 = vmatpush3.bf16.msra.mxu1 %v4637_v2  ;;  %v4659_v18 = vld [vmem:[#allocation7 + $0x44] ss:$8 sps:$4 sm:$0xff]   ;;  %v4657_v19 = vld [vmem:[#allocation7 + $0x40] ss:$8 sps:$4 sm:$0xff]   ;;  %v4662_v20 = vld [vmem:[#allocation7 + $0x54] ss:$8 sps:$4 sm:$0xff]   ;;  %p5134_p3 = por %p5133_p2, %p5132_p1 }
  0x86   :  { %4553 = vmatprep.subr.bf16.mxu1 %v5174_v0  ;;  %v4660_v21 = vld [vmem:[#allocation7 + $0x50] ss:$8 sps:$4 sm:$0xff]   ;;  %v4665_v22 = vld [vmem:[#allocation7 + $0x64] ss:$8 sps:$4 sm:$0xff]   ;;  %v4663_v23 = vld [vmem:[#allocation7 + $0x60] ss:$8 sps:$4 sm:$0xff]  }
  0x87   :  { %v4668_v24 = vld [vmem:[#allocation7 + $0x74] ss:$8 sps:$4 sm:$0xff]   ;;  %v4666_v25 = vld [vmem:[#allocation7 + $0x70] ss:$8 sps:$4 sm:$0xff]   ;;  %p5135_p4 = pnand %p5134_p3, %p5128_p0 }
  0x88   :  { %v4671_v27 = vld [vmem:[#allocation8 + $0x4] ss:$16 sps:$4 sm:$0xff]   ;;  %v4027_v28 = vld [vmem:[%s5505_s2] ss:$0 sm:$0xff]  ;;  %v4669_v37 = vld [vmem:[#allocation8] ss:$16 sps:$4 sm:$0xff]  }
  0x89   :  { %4554 = vmatpush3.bf16.msra.mxu1 %v4638_v3  ;;  %v4674_v39 = vld [vmem:[#allocation8 + $0x24] ss:$16 sps:$4 sm:$0xff]   ;;  %v4672_v40 = vld [vmem:[#allocation8 + $0x20] ss:$16 sps:$4 sm:$0xff]  }
  0x8a   :  { %4555 = vmatprep.subr.bf16.mxu1 %v5174_v0  ;;  %v4677_v41 = vld [vmem:[#allocation8 + $0x44] ss:$16 sps:$4 sm:$0xff]   ;;  %v4675_v42 = vld [vmem:[#allocation8 + $0x40] ss:$16 sps:$4 sm:$0xff]  }
  0x8b   :  { %v4680_v43 = vld [vmem:[#allocation8 + $0x64] ss:$16 sps:$4 sm:$0xff]   ;;  %v4678_v44 = vld [vmem:[#allocation8 + $0x60] ss:$16 sps:$4 sm:$0xff]  }
  0x8c   :  { %v4683_v45 = vld [vmem:[#allocation8 + $0x84] ss:$16 sps:$4 sm:$0xff]   ;;  %v4681_v46 = vld [vmem:[#allocation8 + $0x80] ss:$16 sps:$4 sm:$0xff]  }
  0x8d   :  { %4556 = vmatpush3.bf16.msra.mxu1 %v4639_v4  ;;  %v4686_v47 = vld [vmem:[#allocation8 + $0xa4] ss:$16 sps:$4 sm:$0xff]   ;;  %v4684_v48 = vld [vmem:[#allocation8 + $0xa0] ss:$16 sps:$4 sm:$0xff]  }
  0x8e   :  { %4557 = vmatprep.subr.bf16.mxu1 %v5174_v0  ;;  %v4689_v49 = vld [vmem:[#allocation8 + $0xc4] ss:$16 sps:$4 sm:$0xff]   ;;  %v4687_v50 = vld [vmem:[#allocation8 + $0xc0] ss:$16 sps:$4 sm:$0xff]  }
  0x8f   :  { %v4692_v51 = vld [vmem:[#allocation8 + $0xe4] ss:$16 sps:$4 sm:$0xff]   ;;  %v4690_v52 = vld [vmem:[#allocation8 + $0xe0] ss:$16 sps:$4 sm:$0xff]  }
  0x90   :  { %v4695_v53 = vld [vmem:[#allocation8 + $0x104] ss:$16 sps:$4 sm:$0xff]   ;;  %v4693_v54 = vld [vmem:[#allocation8 + $0x100] ss:$16 sps:$4 sm:$0xff]  }
  0x91   :  { %4558 = vmatpush3.bf16.msra.mxu1 %v4640_v5  ;;  %v4698_v55 = vld [vmem:[#allocation8 + $0x124] ss:$16 sps:$4 sm:$0xff]   ;;  %v4696_v56 = vld [vmem:[#allocation8 + $0x120] ss:$16 sps:$4 sm:$0xff]   ;;  %v4719_v5 = vld [vmem:[#allocation8 + $0xc] ss:$16 sps:$4 sm:$0xff]  }
  0x92   :  { %4559 = vmatprep.subr.bf16.mxu1 %v5174_v0  ;;  %v4701_v57 = vld [vmem:[#allocation8 + $0x144] ss:$16 sps:$4 sm:$0xff]   ;;  %v4699_v58 = vld [vmem:[#allocation8 + $0x140] ss:$16 sps:$4 sm:$0xff]  }
  0x93   :  { %v4704_v59 = vld [vmem:[#allocation8 + $0x164] ss:$16 sps:$4 sm:$0xff]   ;;  %v4702_v60 = vld [vmem:[#allocation8 + $0x160] ss:$16 sps:$4 sm:$0xff]  }
  0x94   :  { %v4707_v61 = vld [vmem:[#allocation8 + $0x184] ss:$16 sps:$4 sm:$0xff]   ;;  %v4705_v62 = vld [vmem:[#allocation8 + $0x180] ss:$16 sps:$4 sm:$0xff]  }
  0x95   :  { %4560 = vmatpush3.bf16.msra.mxu1 %v4641_v6  ;;  %v4710_v63 = vld [vmem:[#allocation8 + $0x1a4] ss:$16 sps:$4 sm:$0xff]   ;;  %v4711_v2 = vld [vmem:[#allocation8 + $0x1c0] ss:$16 sps:$4 sm:$0xff]  }
  0x96   :  { %4561 = vmatprep.subr.bf16.mxu1 %v5174_v0  ;;  %v4713_v1 = vld [vmem:[#allocation8 + $0x1c4] ss:$16 sps:$4 sm:$0xff]   ;;  %v4714_v4 = vld [vmem:[#allocation8 + $0x1e0] ss:$16 sps:$4 sm:$0xff]  }
  0x97   :  { %v4716_v3 = vld [vmem:[#allocation8 + $0x1e4] ss:$16 sps:$4 sm:$0xff]  }
  0x98   :  { %v925_v6 = vld [vmem:[#allocation10] sm:$0xff] }
  0x99   :  { %4562 = vmatpush3.bf16.msra.mxu1 %v4642_v7  ;;  %v929_v7 = vld [vmem:[#allocation10 + $0x20] sm:$0xff] }
  0x9a   :  { %4563 = vmatprep.subr.bf16.mxu1 %v5174_v0  ;;  %v4708_v0 = vld [vmem:[#allocation8 + $0x1a0] ss:$16 sps:$4 sm:$0xff]  }
  0x9d   :  { %4564 = vmatpush3.bf16.msra.mxu1 %v4643_v8  ;;  %v4118_v8 = vcombine.high %v925_v6, %v929_v7 }
  0x9e   :  { %372 = vmatprep.subr.bf16.mxu1 %v4647_v9  ;;  %v4117_v9 = vcombine.low %v925_v6, %v929_v7 }
  0x9f   :  { %2503 = vmatprep.subr.bf16.mxu0 %v4118_v8 }
  0xa0   :  { %4566 = vmatmul.mubr.bf16.vlgmr.msra.gmra.mrb[0].mxu1 %v4644_v10  ;;  %v933_v10 = vld [vmem:[#allocation10 + $0x40] sm:$0xff]  ;;  %2504 = vmatpush1.bf16.msra.mxu0 %v4117_v9 }
  0xa1   :  { %373 = vmatpush1.bf16.msra.mxu1 %v4645_v11  ;;  %404 = vmatprep.mubr.bf16.mxu1 %v5176_v26  ;;  %v937_v11 = vld [vmem:[#allocation10 + $0x60] sm:$0xff] }
  0xa2   :  { %374 = vmatprep.subr.bf16.mxu1 %v4650_v12  ;;  %v4126_v12 = vcombine.high %v933_v10, %v937_v11  ;;  %v965_v26 = vld [vmem:[#allocation10 + $0x140] sm:$0xff] }
  0xa4   :  { %2505 = vmatprep.subr.bf16.mxu0 %v4126_v12 }
  0xa5   :  { %375 = vmatpush1.bf16.msra.mxu1 %v4648_v13  ;;  %v4125_v13 = vcombine.low %v933_v10, %v937_v11 }
  0xa6   :  { %376 = vmatprep.subr.bf16.mxu1 %v4653_v14  ;;  %v941_v14 = vld [vmem:[#allocation10 + $0x80] sm:$0xff] }
  0xa7   :  { %2506 = vmatpush1.bf16.msra.mxu0 %v4125_v13 }
  0xa9   :  { %377 = vmatpush1.bf16.msra.mxu1 %v4651_v15  ;;  %v945_v15 = vld [vmem:[#allocation10 + $0xa0] sm:$0xff] }
  0xaa   :  { %378 = vmatprep.subr.bf16.mxu1 %v4656_v16  ;;  %v4134_v16 = vcombine.high %v941_v14, %v945_v15 }
  0xac   :  { %2507 = vmatprep.subr.bf16.mxu0 %v4134_v16 }
  0xad   :  { %379 = vmatpush1.bf16.msra.mxu1 %v4654_v17  ;;  %v4133_v17 = vcombine.low %v941_v14, %v945_v15 }
  0xae   :  { %380 = vmatprep.subr.bf16.mxu1 %v4659_v18  ;;  %v949_v18 = vld [vmem:[#allocation10 + $0xc0] sm:$0xff] }
  0xaf   :  { %2508 = vmatpush1.bf16.msra.mxu0 %v4133_v17 }
  0xb1   :  { %381 = vmatpush1.bf16.msra.mxu1 %v4657_v19  ;;  %v953_v19 = vld [vmem:[#allocation10 + $0xe0] sm:$0xff] }
  0xb2   :  { %382 = vmatprep.subr.bf16.mxu1 %v4662_v20  ;;  %v4142_v20 = vcombine.high %v949_v18, %v953_v19 }
  0xb4   :  { %2509 = vmatprep.subr.bf16.mxu0 %v4142_v20  ;;  %v4722_v20 = vld [vmem:[#allocation8 + $0x2c] ss:$16 sps:$4 sm:$0xff]  }
  0xb5   :  { %383 = vmatpush1.bf16.msra.mxu1 %v4660_v21  ;;  %v4141_v21 = vcombine.low %v949_v18, %v953_v19  ;;  %v4717_v19 = vld [vmem:[#allocation8 + $0x8] ss:$16 sps:$4 sm:$0xff]  }
  0xb6   :  { %384 = vmatprep.subr.bf16.mxu1 %v4665_v22  ;;  %v957_v22 = vld [vmem:[#allocation10 + $0x100] sm:$0xff] }
  0xb7   :  { %2510 = vmatpush1.bf16.msra.mxu0 %v4141_v21  ;;  %v4720_v21 = vld [vmem:[#allocation8 + $0x28] ss:$16 sps:$4 sm:$0xff]  }
  0xb9   :  { %385 = vmatpush1.bf16.msra.mxu1 %v4663_v23  ;;  %v961_v23 = vld [vmem:[#allocation10 + $0x120] sm:$0xff] }
  0xba   :  { %386 = vmatprep.subr.bf16.mxu1 %v4668_v24  ;;  %v4150_v24 = vcombine.high %v957_v22, %v961_v23 }
  0xbc   :  { %2511 = vmatprep.subr.bf16.mxu0 %v4150_v24  ;;  %v4728_v24 = vld [vmem:[#allocation8 + $0x6c] ss:$16 sps:$4 sm:$0xff]  }
  0xbd   :  { %387 = vmatpush1.bf16.msra.mxu1 %v4666_v25  ;;  %v4149_v25 = vcombine.low %v957_v22, %v961_v23  ;;  %v4725_v22 = vld [vmem:[#allocation8 + $0x4c] ss:$16 sps:$4 sm:$0xff]   ;;  %v4723_v23 = vld [vmem:[#allocation8 + $0x48] ss:$16 sps:$4 sm:$0xff]  }
  0xbe   :  { %827 = vmatprep.subr.bf16.mxu1 %v4671_v27  ;;  %v969_v27 = vld [vmem:[#allocation10 + $0x160] sm:$0xff] }
  0xbf   :  { %2512 = vmatpush1.bf16.msra.mxu0 %v4149_v25  ;;  %v4726_v25 = vld [vmem:[#allocation8 + $0x68] ss:$16 sps:$4 sm:$0xff]  }
 0x173   :  { %v254_v29 = vpop.f32.mrb[0].mxu1 }
 0x174   :  { %v255_v30 = vadd.f32 %v4027_v28, %v254_v29  ;;  %v4567_v31 = vpop.f32.mrb[1].mxu1  ;;  %v4157_v29 = vcombine.low %v965_v26, %v969_v27 }
 0x175   :  { %v257_v32 = vpop.f32.mrb[2].mxu1  ;;  %v977_v31 = vld [vmem:[#allocation10 + $0x1a0] sm:$0xff] }
 0x176   :  { %v258_v33 = vadd.f32 %v4027_v28, %v257_v32  ;;  %v4568_v34 = vpop.f32.mrb[3].mxu1  ;;  %v261_v35 = vmax.f32 %v255_v30, 0.0  ;;  %v4158_v28 = vcombine.high %v965_v26, %v969_v27  ;;  %v973_v30 = vld [vmem:[#allocation10 + $0x180] sm:$0xff]  ;;  %v4731_v26 = vld [vmem:[#allocation8 + $0x8c] ss:$16 sps:$4 sm:$0xff]  }
 0x177   :  { %v4166_v32 = vcombine.high %v973_v30, %v977_v31  ;;  %v981_v34 = vld [vmem:[#allocation10 + $0x1c0] sm:$0xff]  ;;  %v4729_v27 = vld [vmem:[#allocation8 + $0x88] ss:$16 sps:$4 sm:$0xff]  }
 0x178   :  { %v262_v36 = vmax.f32 %v258_v33, 0.0  ;;  %2513 = vmatprep.subr.bf16.mxu0 %v4158_v28  ;;  %v4165_v33 = vcombine.low %v973_v30, %v977_v31  ;;  %v4734_v28 = vld [vmem:[#allocation8 + $0xac] ss:$16 sps:$4 sm:$0xff]   ;;  %v4735_v31 = vld [vmem:[#allocation8 + $0xc8] ss:$16 sps:$4 sm:$0xff]  }
 0x179   :  { %2514 = vmatpush1.bf16.msra.mxu0 %v4157_v29  ;;  %v4732_v29 = vld [vmem:[#allocation8 + $0xa8] ss:$16 sps:$4 sm:$0xff]   ;;  %v4737_v30 = vld [vmem:[#allocation8 + $0xcc] ss:$16 sps:$4 sm:$0xff]  }
 0x17a   :  { %v263_v38 = vpack.c.bf16 %v262_v36, %v261_v35  ;;  %2515 = vmatprep.subr.bf16.mxu0 %v4166_v32  ;;  %v985_v35 = vld [vmem:[#allocation10 + $0x1e0] sm:$0xff]  ;;  %v4740_v32 = vld [vmem:[#allocation8 + $0xec] ss:$16 sps:$4 sm:$0xff]  }
 0x17b   :  { %v4174_v36 = vcombine.high %v981_v34, %v985_v35 }
 0x17c   :  { %405 = vmatmul.mubr.bf16.vlgmr.msra.gmra.mrb[4].mxu1 %v263_v38  ;;  %v989_v38 = vld [vmem:[#allocation10 + $0x200] sm:$0xff] }
 0x17d   :  { %828 = vmatpush1.bf16.msra.mxu1 %v4669_v37  ;;  %2516 = vmatpush1.bf16.msra.mxu0 %v4165_v33  ;;  %v4173_v37 = vcombine.low %v981_v34, %v985_v35  ;;  %v4738_v33 = vld [vmem:[#allocation8 + $0xe8] ss:$16 sps:$4 sm:$0xff]   ;;  %v4743_v34 = vld [vmem:[#allocation8 + $0x10c] ss:$16 sps:$4 sm:$0xff]  }
 0x17e   :  { %829 = vmatprep.subr.bf16.mxu1 %v4674_v39  ;;  %2517 = vmatprep.subr.bf16.mxu0 %v4174_v36  ;;  %v993_v39 = vld [vmem:[#allocation10 + $0x220] sm:$0xff]  ;;  %v4741_v35 = vld [vmem:[#allocation8 + $0x108] ss:$16 sps:$4 sm:$0xff]   ;;  %v4746_v36 = vld [vmem:[#allocation8 + $0x12c] ss:$16 sps:$4 sm:$0xff]  }
 0x181   :  { %830 = vmatpush1.bf16.msra.mxu1 %v4672_v40  ;;  %v4182_v40 = vcombine.high %v989_v38, %v993_v39  ;;  %2518 = vmatpush1.bf16.msra.mxu0 %v4173_v37  ;;  %v4744_v37 = vld [vmem:[#allocation8 + $0x128] ss:$16 sps:$4 sm:$0xff]  }
 0x182   :  { %831 = vmatprep.subr.bf16.mxu1 %v4677_v41  ;;  %v4181_v41 = vcombine.low %v989_v38, %v993_v39  ;;  %v4749_v38 = vld [vmem:[#allocation8 + $0x14c] ss:$16 sps:$4 sm:$0xff]   ;;  %v4747_v39 = vld [vmem:[#allocation8 + $0x148] ss:$16 sps:$4 sm:$0xff]  }
 0x183   :  { %2519 = vmatprep.subr.bf16.mxu0 %v4182_v40  ;;  %v4752_v40 = vld [vmem:[#allocation8 + $0x16c] ss:$16 sps:$4 sm:$0xff]  }
 0x185   :  { %832 = vmatpush1.bf16.msra.mxu1 %v4675_v42  ;;  %v997_v42 = vld [vmem:[#allocation10 + $0x240] sm:$0xff]  ;;  %2520 = vmatpush1.bf16.msra.mxu0 %v4181_v41  ;;  %v4750_v41 = vld [vmem:[#allocation8 + $0x168] ss:$16 sps:$4 sm:$0xff]  }
 0x186   :  { %833 = vmatprep.subr.bf16.mxu1 %v4680_v43  ;;  %v1001_v43 = vld [vmem:[#allocation10 + $0x260] sm:$0xff] }
 0x189   :  { %834 = vmatpush1.bf16.msra.mxu1 %v4678_v44  ;;  %v4190_v44 = vcombine.high %v997_v42, %v1001_v43 }
 0x18a   :  { %835 = vmatprep.subr.bf16.mxu1 %v4683_v45  ;;  %v4189_v45 = vcombine.low %v997_v42, %v1001_v43  ;;  %v4755_v42 = vld [vmem:[#allocation8 + $0x18c] ss:$16 sps:$4 sm:$0xff]   ;;  %v4753_v43 = vld [vmem:[#allocation8 + $0x188] ss:$16 sps:$4 sm:$0xff]  }
 0x18b   :  { %2521 = vmatprep.subr.bf16.mxu0 %v4190_v44  ;;  %v4758_v44 = vld [vmem:[#allocation8 + $0x1ac] ss:$16 sps:$4 sm:$0xff]  }
 0x18c   :  { %2522 = vmatpush1.bf16.msra.mxu0 %v4189_v45  ;;  %v4756_v45 = vld [vmem:[#allocation8 + $0x1a8] ss:$16 sps:$4 sm:$0xff]  }
 0x18d   :  { %836 = vmatpush1.bf16.msra.mxu1 %v4681_v46  ;;  %v1005_v46 = vld [vmem:[#allocation10 + $0x280] sm:$0xff] }
 0x18e   :  { %837 = vmatprep.subr.bf16.mxu1 %v4686_v47  ;;  %v1009_v47 = vld [vmem:[#allocation10 + $0x2a0] sm:$0xff] }
 0x191   :  { %838 = vmatpush1.bf16.msra.mxu1 %v4684_v48  ;;  %v282_v48 = vlaneseq }
 0x192   :  { %839 = vmatprep.subr.bf16.mxu1 %v4689_v49  ;;  %v4198_v49 = vcombine.high %v1005_v46, %v1009_v47 }
 0x194   :  { %2523 = vmatprep.subr.bf16.mxu0 %v4198_v49  ;;  %v926_v49 = vld [vmem:[#allocation10 + $0x8] sm:$0xff] }
 0x195   :  { %840 = vmatpush1.bf16.msra.mxu1 %v4687_v50  ;;  %v4197_v50 = vcombine.low %v1005_v46, %v1009_v47  ;;  %v4761_v46 = vld [vmem:[#allocation8 + $0x1cc] ss:$16 sps:$4 sm:$0xff]   ;;  %v4759_v47 = vld [vmem:[#allocation8 + $0x1c8] ss:$16 sps:$4 sm:$0xff]  }
 0x196   :  { %841 = vmatprep.subr.bf16.mxu1 %v4692_v51  ;;  %v1013_v51 = vld [vmem:[#allocation10 + $0x2c0] sm:$0xff] }
 0x197   :  { %2524 = vmatpush1.bf16.msra.mxu0 %v4197_v50  ;;  %v930_v50 = vld [vmem:[#allocation10 + $0x28] sm:$0xff] }
 0x199   :  { %842 = vmatpush1.bf16.msra.mxu1 %v4690_v52  ;;  %v1017_v52 = vld [vmem:[#allocation10 + $0x2e0] sm:$0xff] }
 0x19a   :  { %843 = vmatprep.subr.bf16.mxu1 %v4695_v53  ;;  %v5371_v53 = vshrl.u32 %v282_v48, 7  ;;  %v4764_v48 = vld [vmem:[#allocation8 + $0x1ec] ss:$16 sps:$4 sm:$0xff]  }
 0x19d   :  { %844 = vmatpush1.bf16.msra.mxu1 %v4693_v54  ;;  %v4206_v54 = vcombine.high %v1013_v51, %v1017_v52 }
 0x19e   :  { %845 = vmatprep.subr.bf16.mxu1 %v4698_v55  ;;  %v4205_v55 = vcombine.low %v1013_v51, %v1017_v52  ;;  %v4762_v51 = vld [vmem:[#allocation8 + $0x1e8] ss:$16 sps:$4 sm:$0xff]   ;;  %v4120_v52 = vcombine.high %v926_v49, %v930_v50 }
 0x19f   :  { %2525 = vmatprep.subr.bf16.mxu0 %v4206_v54  ;;  %v934_v54 = vld [vmem:[#allocation10 + $0x48] sm:$0xff] }
 0x1a0   :  { %2526 = vmatpush1.bf16.msra.mxu0 %v4205_v55  ;;  %v938_v55 = vld [vmem:[#allocation10 + $0x68] sm:$0xff] }
 0x1a1   :  { %846 = vmatpush1.bf16.msra.mxu1 %v4696_v56  ;;  %v1021_v56 = vld [vmem:[#allocation10 + $0x300] sm:$0xff] }
 0x1a2   :  { %847 = vmatprep.subr.bf16.mxu1 %v4701_v57  ;;  %v1025_v57 = vld [vmem:[#allocation10 + $0x320] sm:$0xff] }
 0x1a5   :  { %848 = vmatpush1.bf16.msra.mxu1 %v4699_v58  ;;  %v5374_v58 = vsub.s32 0, %v5371_v53 }
 0x1a6   :  { %849 = vmatprep.subr.bf16.mxu1 %v4704_v59  ;;  %v4214_v59 = vcombine.high %v1021_v56, %v1025_v57 }
 0x1a8   :  { %2527 = vmatprep.subr.bf16.mxu0 %v4214_v59  ;;  %v942_v59 = vld [vmem:[#allocation10 + $0x88] sm:$0xff] }
 0x1a9   :  { %850 = vmatpush1.bf16.msra.mxu1 %v4702_v60  ;;  %v280_v60 = vld [vmem:[%s5507_s4] sm:$0x3] }
 0x1aa   :  { %851 = vmatprep.subr.bf16.mxu1 %v4707_v61  ;;  %v5380_v61 = vsub.s32 1, %v5371_v53 }
 0x1ad   :  { %852 = vmatpush1.bf16.msra.mxu1 %v4705_v62  ;;  %v4213_v62 = vcombine.low %v1021_v56, %v1025_v57  ;;  %v4119_v56 = vcombine.low %v926_v49, %v930_v50  ;;  %v4128_v57 = vcombine.high %v934_v54, %v938_v55 }
 0x1ae   :  { %853 = vmatprep.subr.bf16.mxu1 %v4710_v63  ;;  %v1029_v63 = vld [vmem:[#allocation10 + $0x340] sm:$0xff] }
 0x1af   :  { %2528 = vmatpush1.bf16.msra.mxu0 %v4213_v62  ;;  %v4127_v62 = vcombine.low %v934_v54, %v938_v55 }
 0x1b1   :  { %854 = vmatpush1.bf16.msra.mxu1 %v4708_v0  ;;  %v1033_v0 = vld [vmem:[#allocation10 + $0x360] sm:$0xff] }
 0x1b2   :  { %855 = vmatprep.subr.bf16.mxu1 %v4713_v1  ;;  %v285_v1 = vrot.slane %v280_v60, %v5374_v58 }
 0x1b5   :  { %856 = vmatpush1.bf16.msra.mxu1 %v4711_v2  ;;  %v4222_v2 = vcombine.high %v1029_v63, %v1033_v0 }
 0x1b6   :  { %857 = vmatprep.subr.bf16.mxu1 %v4716_v3  ;;  %v289_v3 = vrot.slane %v280_v60, %v5380_v61  ;;  %v946_v60 = vld [vmem:[#allocation10 + $0xa8] sm:$0xff] }
 0x1b7   :  { %2529 = vmatprep.subr.bf16.mxu0 %v4222_v2  ;;  %v4135_v2 = vcombine.low %v942_v59, %v946_v60 }
 0x1b9   :  { %858 = vmatpush1.bf16.msra.mxu1 %v4714_v4  ;;  %v4221_v4 = vcombine.low %v1029_v63, %v1033_v0  ;;  %v4136_v63 = vcombine.high %v942_v59, %v946_v60  ;;  %v950_v0 = vld [vmem:[#allocation10 + $0xc8] sm:$0xff] }
 0x1ba   :  { %870 = vmatprep.subr.bf16.mxu1 %v4719_v5 }
 0x1bb   :  { %2530 = vmatpush1.bf16.msra.mxu0 %v4221_v4  ;;  %v958_v4 = vld [vmem:[#allocation10 + $0x108] sm:$0xff] }
 0x24f   :  { %v406_v5 = vpop.f32.mrb[4].mxu1 }
 0x250   :  { %v407_v6 = vadd.f32 %v406_v5, %v285_v1  ;;  %v408_v7 = vpop.f32.mrb[5].mxu1  ;;  %v962_v5 = vld [vmem:[#allocation10 + $0x128] sm:$0xff] }
 0x251   :  { %v409_v8 = vadd.f32 %v408_v7, %v289_v3  ;;  %v410_v9 = vpop.f32.mrb[6].mxu1  ;;  %v4152_v7 = vcombine.high %v958_v4, %v962_v5 }
 0x252   :  { %v411_v10 = vadd.f32 %v410_v9, %v285_v1  ;;  %v412_v11 = vpop.f32.mrb[7].mxu1  ;;  %v415_v13 = vmax.f32 %v407_v6, 0.0  ;;  %v954_v1 = vld [vmem:[#allocation10 + $0xe8] sm:$0xff] }
 0x253   :  { %v413_v12 = vadd.f32 %v412_v11, %v289_v3  ;;  %v416_v15 = vmax.f32 %v409_v8, 0.0  ;;  %v4144_v3 = vcombine.high %v950_v0, %v954_v1  ;;  %v4143_v6 = vcombine.low %v950_v0, %v954_v1  ;;  %v966_v8 = vld [vmem:[#allocation10 + $0x148] sm:$0xff] }
 0x254   :  { %v417_v14 = vmax.f32 %v411_v10, 0.0  ;;  %v970_v9 = vld [vmem:[#allocation10 + $0x168] sm:$0xff]  ;;  %v4151_v10 = vcombine.low %v958_v4, %v962_v5 }
 0x255   :  { %v418_v16 = vmax.f32 %v413_v12, 0.0  ;;  %v4160_v11 = vcombine.high %v966_v8, %v970_v9  ;;  %v974_v12 = vld [vmem:[#allocation10 + $0x188] sm:$0xff] }
 0x256   :  { %v5384_v17 = vpack.c.bf16 %v417_v14, %v415_v13  ;;  %v978_v13 = vld [vmem:[#allocation10 + $0x1a8] sm:$0xff]  ;;  %v4159_v14 = vcombine.low %v966_v8, %v970_v9  ;;  %v5407_v8 = vld [vmem:[%s5509_s6] sm:$0xf] }
 0x257   :  { %v420_v18 = vpack.c.bf16 %v418_v16, %v416_v15  ;;  %v4168_v15 = vcombine.high %v974_v12, %v978_v13  ;;  %v982_v16 = vld [vmem:[#allocation10 + $0x1c8] sm:$0xff]  ;;  %v490_v9 = vrot.slane %v5407_v8, %v5374_v58 }
 0x259   :  { %859 = vmatprep.mubr.bf16.mxu1 %v420_v18 }
 0x25a   :  { %860 = vmatmul.mubr.bf16.vlgmr.msra.gmra.mrb[8].mxu1 %v5384_v17 }
 0x25b   :  { %871 = vmatpush1.bf16.msra.mxu1 %v4717_v19  ;;  %902 = vmatprep.mubr.bf16.mxu1 %v420_v18  ;;  %v1037_v18 = vld [vmem:[#allocation10 + $0x380] sm:$0xff] }
 0x25c   :  { %872 = vmatprep.subr.bf16.mxu1 %v4722_v20  ;;  %v1041_v19 = vld [vmem:[#allocation10 + $0x3a0] sm:$0xff] }
 0x25d   :  { %v4230_v20 = vcombine.high %v1037_v18, %v1041_v19 }
 0x25f   :  { %873 = vmatpush1.bf16.msra.mxu1 %v4720_v21  ;;  %v4167_v21 = vcombine.low %v974_v12, %v978_v13  ;;  %2531 = vmatprep.subr.bf16.mxu0 %v4230_v20 }
 0x260   :  { %874 = vmatprep.subr.bf16.mxu1 %v4725_v22  ;;  %v4229_v22 = vcombine.low %v1037_v18, %v1041_v19 }
 0x262   :  { %2532 = vmatpush1.bf16.msra.mxu0 %v4229_v22 }
 0x263   :  { %875 = vmatpush1.bf16.msra.mxu1 %v4723_v23 }
 0x264   :  { %876 = vmatprep.subr.bf16.mxu1 %v4728_v24  ;;  %v990_v24 = vld [vmem:[#allocation10 + $0x208] sm:$0xff] }
 0x267   :  { %877 = vmatpush1.bf16.msra.mxu1 %v4726_v25  ;;  %v994_v25 = vld [vmem:[#allocation10 + $0x228] sm:$0xff] }
 0x268   :  { %878 = vmatprep.subr.bf16.mxu1 %v4731_v26  ;;  %v1045_v26 = vld [vmem:[#allocation10 + $0x3c0] sm:$0xff] }
 0x26b   :  { %879 = vmatpush1.bf16.msra.mxu1 %v4729_v27  ;;  %v1049_v27 = vld [vmem:[#allocation10 + $0x3e0] sm:$0xff] }
 0x26c   :  { %880 = vmatprep.subr.bf16.mxu1 %v4734_v28  ;;  %v4238_v28 = vcombine.high %v1045_v26, %v1049_v27 }
 0x26e   :  { %2533 = vmatprep.subr.bf16.mxu0 %v4238_v28 }
 0x26f   :  { %881 = vmatpush1.bf16.msra.mxu1 %v4732_v29 }
 0x270   :  { %882 = vmatprep.subr.bf16.mxu1 %v4737_v30  ;;  %v4237_v30 = vcombine.low %v1045_v26, %v1049_v27  ;;  %v1066_v26 = vld [vmem:[#allocation10 + $0x468] sm:$0xff] }
 0x272   :  { %2534 = vmatpush1.bf16.msra.mxu0 %v4237_v30 }
 0x273   :  { %883 = vmatpush1.bf16.msra.mxu1 %v4735_v31  ;;  %v4184_v31 = vcombine.high %v990_v24, %v994_v25 }
 0x274   :  { %884 = vmatprep.subr.bf16.mxu1 %v4740_v32  ;;  %v998_v32 = vld [vmem:[#allocation10 + $0x248] sm:$0xff] }
 0x277   :  { %885 = vmatpush1.bf16.msra.mxu1 %v4738_v33  ;;  %v1002_v33 = vld [vmem:[#allocation10 + $0x268] sm:$0xff] }
 0x278   :  { %886 = vmatprep.subr.bf16.mxu1 %v4743_v34  ;;  %v5388_v34 = vld [vmem:[#allocation10 + $0x400] sm:$0xff] }
 0x27b   :  { %887 = vmatpush1.bf16.msra.mxu1 %v4741_v35  ;;  %v5390_v35 = vld [vmem:[#allocation10 + $0x420] sm:$0xff] }
 0x27c   :  { %888 = vmatprep.subr.bf16.mxu1 %v4746_v36  ;;  %v5392_v36 = vld [vmem:[#allocation10 + $0x408] sm:$0xff] }
 0x27f   :  { %889 = vmatpush1.bf16.msra.mxu1 %v4744_v37  ;;  %v4246_v37 = vcombine.high %v5388_v34, %v5390_v35 }
 0x280   :  { %890 = vmatprep.subr.bf16.mxu1 %v4749_v38  ;;  %v5396_v38 = vld [vmem:[#allocation10 + $0x428] sm:$0xff] }
 0x281   :  { %2546 = vmatprep.subr.bf16.mxu0 %v4246_v37  ;;  %v1074_v37 = vld [vmem:[#allocation10 + $0x4a8] sm:$0xff] }
 0x283   :  { %891 = vmatpush1.bf16.msra.mxu1 %v4747_v39  ;;  %v4183_v39 = vcombine.low %v990_v24, %v994_v25  ;;  %v1065_v24 = vld [vmem:[#allocation10 + $0x460] sm:$0xff]  ;;  %v1062_v25 = vld [vmem:[#allocation10 + $0x448] sm:$0xff] }
 0x284   :  { %892 = vmatprep.subr.bf16.mxu1 %v4752_v40  ;;  %v4245_v40 = vcombine.low %v5388_v34, %v5390_v35  ;;  %v4256_v30 = vcombine.high %v1062_v25, %v1066_v26 }
 0x287   :  { %893 = vmatpush1.bf16.msra.mxu1 %v4750_v41  ;;  %v4247_v41 = vcombine.low %v5392_v36, %v5396_v38 }
 0x288   :  { %894 = vmatprep.subr.bf16.mxu1 %v4755_v42  ;;  %v4192_v42 = vcombine.high %v998_v32, %v1002_v33 }
 0x28b   :  { %895 = vmatpush1.bf16.msra.mxu1 %v4753_v43  ;;  %v1006_v43 = vld [vmem:[#allocation10 + $0x288] sm:$0xff] }
 0x28c   :  { %896 = vmatprep.subr.bf16.mxu1 %v4758_v44  ;;  %v1010_v44 = vld [vmem:[#allocation10 + $0x2a8] sm:$0xff] }
 0x28d   :  { %v4199_v49 = vcombine.low %v1006_v43, %v1010_v44 }
 0x28f   :  { %897 = vmatpush1.bf16.msra.mxu1 %v4756_v45  ;;  %v4191_v45 = vcombine.low %v998_v32, %v1002_v33  ;;  %v1073_v32 = vld [vmem:[#allocation10 + $0x4a0] sm:$0xff]  ;;  %v1070_v33 = vld [vmem:[#allocation10 + $0x488] sm:$0xff] }
 0x290   :  { %898 = vmatprep.subr.bf16.mxu1 %v4761_v46  ;;  %v4200_v46 = vcombine.high %v1006_v43, %v1010_v44  ;;  %v4264_v44 = vcombine.high %v1070_v33, %v1074_v37 }
 0x293   :  { %899 = vmatpush1.bf16.msra.mxu1 %v4759_v47  ;;  %v1014_v47 = vld [vmem:[#allocation10 + $0x2c8] sm:$0xff] }
 0x294   :  { %900 = vmatprep.subr.bf16.mxu1 %v4764_v48  ;;  %v1018_v48 = vld [vmem:[#allocation10 + $0x2e8] sm:$0xff] }
 0x295   :  { %v4208_v50 = vcombine.high %v1014_v47, %v1018_v48  ;;  %v4207_v54 = vcombine.low %v1014_v47, %v1018_v48  ;;  %v1078_v47 = vld [vmem:[#allocation10 + $0x4c8] sm:$0xff] }
 0x296   :  { %v1082_v48 = vld [vmem:[#allocation10 + $0x4e8] sm:$0xff] }
 0x297   :  { %901 = vmatpush1.bf16.msra.mxu1 %v4762_v51  ;;  %v1022_v51 = vld [vmem:[#allocation10 + $0x308] sm:$0xff]  ;;  %v4272_v35 = vcombine.high %v1078_v47, %v1082_v48 }
 0x298   :  { %2589 = vmatprep.subr.bf16.mxu1 %v4120_v52  ;;  %v1026_v52 = vld [vmem:[#allocation10 + $0x328] sm:$0xff] }
 0x299   :  { %v4216_v55 = vcombine.high %v1022_v51, %v1026_v52  ;;  %v4215_v59 = vcombine.low %v1022_v51, %v1026_v52  ;;  %v4271_v52 = vcombine.low %v1078_v47, %v1082_v48 }
 0x29a   :  { %903 = vmatmul.mubr.bf16.vlgmr.msra.gmra.mrb[12].mxu1 %v5384_v17  ;;  %v986_v17 = vld [vmem:[#allocation10 + $0x1e8] sm:$0xff] }
 0x29b   :  { %2590 = vmatpush1.bf16.msra.mxu1 %v4119_v56  ;;  %v4176_v23 = vcombine.high %v982_v16, %v986_v17  ;;  %v4175_v29 = vcombine.low %v982_v16, %v986_v17  ;;  %v1030_v56 = vld [vmem:[#allocation10 + $0x348] sm:$0xff] }
 0x29c   :  { %2591 = vmatprep.subr.bf16.mxu1 %v4128_v57  ;;  %v1034_v57 = vld [vmem:[#allocation10 + $0x368] sm:$0xff] }
 0x29d   :  { %v4224_v60 = vcombine.high %v1030_v56, %v1034_v57  ;;  %v4223_v0 = vcombine.low %v1030_v56, %v1034_v57  ;;  %v1093_v56 = vld [vmem:[#allocation10 + $0x540] sm:$0xff] }
 0x29e   :  { %v1097_v57 = vld [vmem:[#allocation10 + $0x560] sm:$0xff] }
 0x29f   :  { %2592 = vmatpush1.bf16.msra.mxu1 %v4127_v62  ;;  %v1038_v62 = vld [vmem:[#allocation10 + $0x388] sm:$0xff] }
 0x2a0   :  { %2593 = vmatprep.subr.bf16.mxu1 %v4136_v63  ;;  %v1042_v63 = vld [vmem:[#allocation10 + $0x3a8] sm:$0xff] }
 0x2a1   :  { %v4232_v1 = vcombine.high %v1038_v62, %v1042_v63  ;;  %v4231_v4 = vcombine.low %v1038_v62, %v1042_v63 }
 0x2a3   :  { %2594 = vmatpush1.bf16.msra.mxu1 %v4135_v2  ;;  %v1046_v2 = vld [vmem:[#allocation10 + $0x3c8] sm:$0xff] }
 0x2a4   :  { %2595 = vmatprep.subr.bf16.mxu1 %v4144_v3  ;;  %v1050_v3 = vld [vmem:[#allocation10 + $0x3e8] sm:$0xff] }
 0x2a5   :  { %v4240_v5 = vcombine.high %v1046_v2, %v1050_v3 }
 0x2a7   :  { %2596 = vmatpush1.bf16.msra.mxu1 %v4143_v6  ;;  %v4239_v6 = vcombine.low %v1046_v2, %v1050_v3  ;;  %v1101_v2 = vld [vmem:[#allocation10 + $0x580] sm:$0xff] }
 0x2a8   :  { %2597 = vmatprep.subr.bf16.mxu1 %v4152_v7  ;;  %v4248_v7 = vcombine.high %v5392_v36, %v5396_v38  ;;  %v1085_v36 = vld [vmem:[#allocation10 + $0x500] sm:$0xff] }
 0x2a9   :  { %v1089_v38 = vld [vmem:[#allocation10 + $0x520] sm:$0xff] }
 0x2aa   :  { %v4277_v62 = vcombine.low %v1085_v36, %v1089_v38  ;;  %v1105_v3 = vld [vmem:[#allocation10 + $0x5a0] sm:$0xff] }
 0x2ab   :  { %2598 = vmatpush1.bf16.msra.mxu1 %v4151_v10  ;;  %v494_v10 = vrot.slane %v5407_v8, %v5380_v61 }
 0x2ac   :  { %2599 = vmatprep.subr.bf16.mxu1 %v4160_v11 }
 0x2af   :  { %2600 = vmatpush1.bf16.msra.mxu1 %v4159_v14 }
 0x2b0   :  { %2601 = vmatprep.subr.bf16.mxu1 %v4168_v15 }
 0x2b3   :  { %2602 = vmatpush1.bf16.msra.mxu1 %v4167_v21  ;;  %v1061_v21 = vld [vmem:[#allocation10 + $0x440] sm:$0xff] }
 0x2b4   :  { %2603 = vmatprep.subr.bf16.mxu1 %v4176_v23 }
 0x2b7   :  { %2604 = vmatpush1.bf16.msra.mxu1 %v4175_v29  ;;  %v4254_v29 = vcombine.high %v1061_v21, %v1065_v24 }
 0x2b8   :  { %2605 = vmatprep.subr.bf16.mxu1 %v4184_v31  ;;  %v1069_v31 = vld [vmem:[#allocation10 + $0x480] sm:$0xff] }
 0x2b9   :  { %v4262_v43 = vcombine.high %v1069_v31, %v1073_v32 }
 0x2bb   :  { %2606 = vmatpush1.bf16.msra.mxu1 %v4183_v39  ;;  %v4253_v39 = vcombine.low %v1061_v21, %v1065_v24  ;;  %v1118_v21 = vld [vmem:[#allocation10 + $0x608] sm:$0xff] }
 0x2bc   :  { %2607 = vmatprep.subr.bf16.mxu1 %v4192_v42  ;;  %v4255_v42 = vcombine.low %v1062_v25, %v1066_v26 }
 0x2bf   :  { %2608 = vmatpush1.bf16.msra.mxu1 %v4191_v45  ;;  %v1077_v45 = vld [vmem:[#allocation10 + $0x4c0] sm:$0xff] }
 0x2c0   :  { %2609 = vmatprep.subr.bf16.mxu1 %v4200_v46  ;;  %v1081_v46 = vld [vmem:[#allocation10 + $0x4e0] sm:$0xff] }
 0x2c1   :  { %v4270_v34 = vcombine.high %v1077_v45, %v1081_v46  ;;  %v4269_v51 = vcombine.low %v1077_v45, %v1081_v46  ;;  %v1134_v45 = vld [vmem:[#allocation10 + $0x688] sm:$0xff] }
 0x2c2   :  { %v1138_v46 = vld [vmem:[#allocation10 + $0x6a8] sm:$0xff] }
 0x2c3   :  { %2610 = vmatpush1.bf16.msra.mxu1 %v4199_v49  ;;  %v4261_v49 = vcombine.low %v1069_v31, %v1073_v32  ;;  %v1126_v31 = vld [vmem:[#allocation10 + $0x648] sm:$0xff] }
 0x2c4   :  { %2611 = vmatprep.subr.bf16.mxu1 %v4208_v50  ;;  %v4263_v50 = vcombine.low %v1070_v33, %v1074_v37  ;;  %v1130_v32 = vld [vmem:[#allocation10 + $0x668] sm:$0xff] }
 0x2c5   :  { %v4319_v48 = vcombine.low %v1126_v31, %v1130_v32 }
 0x2c7   :  { %2612 = vmatpush1.bf16.msra.mxu1 %v4207_v54  ;;  %v4278_v54 = vcombine.high %v1085_v36, %v1089_v38  ;;  %v1142_v36 = vld [vmem:[#allocation10 + $0x6c8] sm:$0xff] }
 0x2c8   :  { %2613 = vmatprep.subr.bf16.mxu1 %v4216_v55  ;;  %v1146_v38 = vld [vmem:[#allocation10 + $0x6e8] sm:$0xff] }
 0x2cb   :  { %2614 = vmatpush1.bf16.msra.mxu1 %v4215_v59  ;;  %v1094_v59 = vld [vmem:[#allocation10 + $0x548] sm:$0xff] }
 0x2cc   :  { %2615 = vmatprep.subr.bf16.mxu1 %v4224_v60  ;;  %v1098_v60 = vld [vmem:[#allocation10 + $0x568] sm:$0xff] }
 0x2cf   :  { %2616 = vmatpush1.bf16.msra.mxu1 %v4223_v0  ;;  %v4286_v0 = vcombine.high %v1093_v56, %v1097_v57 }
 0x2d0   :  { %2617 = vmatprep.subr.bf16.mxu1 %v4232_v1  ;;  %v4288_v1 = vcombine.high %v1094_v59, %v1098_v60 }
 0x2d3   :  { %2618 = vmatpush1.bf16.msra.mxu1 %v4231_v4  ;;  %v1102_v4 = vld [vmem:[#allocation10 + $0x588] sm:$0xff] }
 0x2d4   :  { %2619 = vmatprep.subr.bf16.mxu1 %v4240_v5  ;;  %v1106_v5 = vld [vmem:[#allocation10 + $0x5a8] sm:$0xff] }
 0x2d7   :  { %2620 = vmatpush1.bf16.msra.mxu1 %v4239_v6  ;;  %v4285_v6 = vcombine.low %v1093_v56, %v1097_v57  ;;  %v1150_v56 = vld [vmem:[#allocation10 + $0x708] sm:$0xff] }
 0x2d8   :  { %2632 = vmatprep.subr.bf16.mxu1 %v4248_v7  ;;  %v4287_v7 = vcombine.low %v1094_v59, %v1098_v60  ;;  %v1154_v57 = vld [vmem:[#allocation10 + $0x728] sm:$0xff]  ;;  %v4335_v60 = vcombine.low %v1142_v36, %v1146_v38 }
 0x32d   :  { %v861_v11 = vpop.f32.mrb[8].mxu1 }
 0x32e   :  { %v862_v12 = vadd.f32 %v861_v11, %v490_v9  ;;  %v863_v13 = vpop.f32.mrb[9].mxu1  ;;  %v1109_v11 = vld [vmem:[#allocation10 + $0x5c0] sm:$0xff] }
 0x32f   :  { %v864_v14 = vadd.f32 %v863_v13, %v494_v10  ;;  %v865_v15 = vpop.f32.mrb[10].mxu1  ;;  %v1110_v13 = vld [vmem:[#allocation10 + $0x5c8] sm:$0xff] }
 0x330   :  { %v866_v16 = vadd.f32 %v865_v15, %v490_v9  ;;  %v867_v17 = vpop.f32.mrb[11].mxu1  ;;  %v913_v19 = vmax.f32 %v862_v12, 0.0  ;;  %v4294_v9 = vcombine.high %v1101_v2, %v1105_v3  ;;  %v1113_v12 = vld [vmem:[#allocation10 + $0x5e0] sm:$0xff]  ;;  %v4293_v15 = vcombine.low %v1101_v2, %v1105_v3  ;;  %v1158_v2 = vld [vmem:[#allocation10 + $0x748] sm:$0xff] }
 0x331   :  { %v868_v18 = vadd.f32 %v867_v17, %v494_v10  ;;  %v914_v22 = vmax.f32 %v864_v14, 0.0  ;;  %v4296_v10 = vcombine.high %v1102_v4, %v1106_v5  ;;  %v1114_v14 = vld [vmem:[#allocation10 + $0x5e8] sm:$0xff]  ;;  %v4302_v17 = vcombine.high %v1109_v11, %v1113_v12 }
 0x332   :  { %v917_v20 = vmax.f32 %v866_v16, 0.0  ;;  %v4295_v16 = vcombine.low %v1102_v4, %v1106_v5  ;;  %v4303_v24 = vcombine.low %v1110_v13, %v1114_v14  ;;  %v1162_v3 = vld [vmem:[#allocation10 + $0x768] sm:$0xff]  ;;  %v4343_v5 = vcombine.low %v1150_v56, %v1154_v57 }
 0x333   :  { %v918_v23 = vmax.f32 %v868_v18, 0.0  ;;  %v4304_v18 = vcombine.high %v1110_v13, %v1114_v14  ;;  %v1166_v13 = vld [vmem:[#allocation10 + $0x788] sm:$0xff] }
 0x334   :  { %v5413_v27 = vpack.c.bf16 %v917_v20, %v913_v19  ;;  %v1117_v19 = vld [vmem:[#allocation10 + $0x600] sm:$0xff]  ;;  %v1170_v14 = vld [vmem:[#allocation10 + $0x7a8] sm:$0xff] }
 0x335   :  { %v5415_v28 = vpack.c.bf16 %v918_v23, %v914_v22  ;;  %v1121_v20 = vld [vmem:[#allocation10 + $0x620] sm:$0xff]  ;;  %v1122_v22 = vld [vmem:[#allocation10 + $0x628] sm:$0xff]  ;;  %v4301_v23 = vcombine.low %v1109_v11, %v1113_v12  ;;  %v501_v11 = vsub.s32 3, %v5371_v53 }
 0x336   :  { %v4310_v25 = vcombine.high %v1117_v19, %v1121_v20  ;;  %v4312_v26 = vcombine.high %v1118_v21, %v1122_v22  ;;  %v4309_v33 = vcombine.low %v1117_v19, %v1121_v20  ;;  %v4311_v37 = vcombine.low %v1118_v21, %v1122_v22  ;;  %v1169_v12 = vld [vmem:[#allocation10 + $0x7a0] sm:$0xff] }
 0x337   :  { %2535 = vmatprep.mubr.bf16.mxu0 %v5415_v28  ;;  %2621 = vmatprep.mubr.bf16.mxu1 %v5415_v28  ;;  %v4360_v19 = vcombine.high %v1166_v13, %v1170_v14  ;;  %v1173_v20 = vld [vmem:[#allocation10 + $0x7c0] sm:$0xff]  ;;  %v502_v21 = vrot.slane %v5407_v8, %v501_v11 }
 0x338   :  { %2536 = vmatmul.mubr.bf16.vlgmr.msra.gmra.mrb[0].mxu0 %v5413_v27  ;;  %2622 = vmatmul.mubr.bf16.vlgmr.msra.gmra.mrb[16].mxu1 %v5413_v27  ;;  %v1177_v22 = vld [vmem:[#allocation10 + $0x7e0] sm:$0xff] }
 0x339   :  { %2547 = vmatpush1.bf16.msra.mxu0 %v4245_v40  ;;  %2633 = vmatpush1.bf16.msra.mxu1 %v4247_v41  ;;  %v1086_v40 = vld [vmem:[#allocation10 + $0x508] sm:$0xff] }
 0x33a   :  { %2548 = vmatprep.subr.bf16.mxu0 %v4254_v29  ;;  %2634 = vmatprep.subr.bf16.mxu1 %v4256_v30  ;;  %v1090_v41 = vld [vmem:[#allocation10 + $0x528] sm:$0xff]  ;;  %v1125_v29 = vld [vmem:[#allocation10 + $0x640] sm:$0xff] }
 0x33b   :  { %v4280_v55 = vcombine.high %v1086_v40, %v1090_v41  ;;  %v4279_v63 = vcombine.low %v1086_v40, %v1090_v41  ;;  %v1129_v30 = vld [vmem:[#allocation10 + $0x660] sm:$0xff]  ;;  %v4327_v41 = vcombine.low %v1134_v45, %v1138_v46 }
 0x33c   :  { %v4317_v47 = vcombine.low %v1125_v29, %v1129_v30 }
 0x33d   :  { %2549 = vmatpush1.bf16.msra.mxu0 %v4253_v39  ;;  %2635 = vmatpush1.bf16.msra.mxu1 %v4255_v42  ;;  %v4318_v39 = vcombine.high %v1125_v29, %v1129_v30  ;;  %v4320_v42 = vcombine.high %v1126_v31, %v1130_v32  ;;  %v4359_v29 = vcombine.low %v1166_v13, %v1170_v14  ;;  %v956_v13 = vld [vmem:[#allocation10 + $0xf8] sm:$0xff] }
 0x33e   :  { %2550 = vmatprep.subr.bf16.mxu0 %v4262_v43  ;;  %2636 = vmatprep.subr.bf16.mxu1 %v4264_v44  ;;  %v1133_v43 = vld [vmem:[#allocation10 + $0x680] sm:$0xff]  ;;  %v4366_v32 = vcombine.high %v1173_v20, %v1177_v22 }
 0x33f   :  { %v1137_v44 = vld [vmem:[#allocation10 + $0x6a0] sm:$0xff] }
 0x340   :  { %v4325_v40 = vcombine.low %v1133_v43, %v1137_v44 }
 0x341   :  { %2551 = vmatpush1.bf16.msra.mxu0 %v4261_v49  ;;  %2637 = vmatpush1.bf16.msra.mxu1 %v4263_v50  ;;  %v4326_v49 = vcombine.high %v1133_v43, %v1137_v44  ;;  %v4328_v50 = vcombine.high %v1134_v45, %v1138_v46  ;;  %v931_v43 = vld [vmem:[#allocation10 + $0x30] sm:$0xff]  ;;  %v928_v44 = vld [vmem:[#allocation10 + $0x18] sm:$0xff] }
 0x342   :  { %2552 = vmatprep.subr.bf16.mxu0 %v4270_v34  ;;  %2638 = vmatprep.subr.bf16.mxu1 %v4272_v35  ;;  %v1141_v34 = vld [vmem:[#allocation10 + $0x6c0] sm:$0xff] }
 0x343   :  { %v1145_v35 = vld [vmem:[#allocation10 + $0x6e0] sm:$0xff] }
 0x344   :  { %v4333_v59 = vcombine.low %v1141_v34, %v1145_v35 }
 0x345   :  { %2553 = vmatpush1.bf16.msra.mxu0 %v4269_v51  ;;  %2639 = vmatpush1.bf16.msra.mxu1 %v4271_v52  ;;  %v4334_v51 = vcombine.high %v1141_v34, %v1145_v35  ;;  %v4336_v52 = vcombine.high %v1142_v36, %v1146_v38 }
 0x346   :  { %2554 = vmatprep.subr.bf16.mxu0 %v4278_v54  ;;  %2640 = vmatprep.subr.bf16.mxu1 %v4280_v55  ;;  %v1149_v54 = vld [vmem:[#allocation10 + $0x700] sm:$0xff] }
 0x347   :  { %v1153_v55 = vld [vmem:[#allocation10 + $0x720] sm:$0xff] }
 0x348   :  { %v4341_v4 = vcombine.low %v1149_v54, %v1153_v55 }
 0x349   :  { %2555 = vmatpush1.bf16.msra.mxu0 %v4277_v62  ;;  %2641 = vmatpush1.bf16.msra.mxu1 %v4279_v63  ;;  %v4342_v62 = vcombine.high %v1149_v54, %v1153_v55  ;;  %v4344_v63 = vcombine.high %v1150_v56, %v1154_v57  ;;  %v936_v54 = vld [vmem:[#allocation10 + $0x58] sm:$0xff] }
 0x34a   :  { %2556 = vmatprep.subr.bf16.mxu0 %v4286_v0  ;;  %2642 = vmatprep.subr.bf16.mxu1 %v4288_v1  ;;  %v1157_v0 = vld [vmem:[#allocation10 + $0x740] sm:$0xff]  ;;  %v940_v55 = vld [vmem:[#allocation10 + $0x78] sm:$0xff] }
 0x34b   :  { %v1161_v1 = vld [vmem:[#allocation10 + $0x760] sm:$0xff] }
 0x34d   :  { %2557 = vmatpush1.bf16.msra.mxu0 %v4285_v6  ;;  %2643 = vmatpush1.bf16.msra.mxu1 %v4287_v7  ;;  %v4350_v6 = vcombine.high %v1157_v0, %v1161_v1  ;;  %v4352_v7 = vcombine.high %v1158_v2, %v1162_v3 }
 0x34e   :  { %2558 = vmatprep.subr.bf16.mxu0 %v4294_v9  ;;  %2644 = vmatprep.subr.bf16.mxu1 %v4296_v10  ;;  %v497_v9 = vsub.s32 2, %v5371_v53  ;;  %v1165_v10 = vld [vmem:[#allocation10 + $0x780] sm:$0xff] }
 0x351   :  { %2559 = vmatpush1.bf16.msra.mxu0 %v4293_v15  ;;  %2645 = vmatpush1.bf16.msra.mxu1 %v4295_v16  ;;  %v4349_v15 = vcombine.low %v1157_v0, %v1161_v1  ;;  %v4351_v16 = vcombine.low %v1158_v2, %v1162_v3  ;;  %v947_v0 = vld [vmem:[#allocation10 + $0xb0] sm:$0xff]  ;;  %v944_v1 = vld [vmem:[#allocation10 + $0x98] sm:$0xff] }
 0x352   :  { %2560 = vmatprep.subr.bf16.mxu0 %v4302_v17  ;;  %2646 = vmatprep.subr.bf16.mxu1 %v4304_v18  ;;  %v498_v17 = vrot.slane %v5407_v8, %v497_v9  ;;  %v4358_v18 = vcombine.high %v1165_v10, %v1169_v12  ;;  %v932_v8 = vld [vmem:[#allocation10 + $0x38] sm:$0xff] }
 0x353   :  { %v4124_v36 = vcombine.high %v928_v44, %v932_v8  ;;  %v948_v2 = vld [vmem:[#allocation10 + $0xb8] sm:$0xff] }
 0x355   :  { %2561 = vmatpush1.bf16.msra.mxu0 %v4301_v23  ;;  %2647 = vmatpush1.bf16.msra.mxu1 %v4303_v24  ;;  %v1174_v23 = vld [vmem:[#allocation10 + $0x7c8] sm:$0xff] }
 0x356   :  { %2562 = vmatprep.subr.bf16.mxu0 %v4310_v25  ;;  %2648 = vmatprep.subr.bf16.mxu1 %v4312_v26  ;;  %v1178_v24 = vld [vmem:[#allocation10 + $0x7e8] sm:$0xff]  ;;  %v4357_v26 = vcombine.low %v1165_v10, %v1169_v12  ;;  %v955_v10 = vld [vmem:[#allocation10 + $0xf0] sm:$0xff]  ;;  %v952_v12 = vld [vmem:[#allocation10 + $0xd8] sm:$0xff] }
 0x359   :  { %2563 = vmatpush1.bf16.msra.mxu0 %v4309_v33  ;;  %2649 = vmatpush1.bf16.msra.mxu1 %v4311_v37  ;;  %v4368_v33 = vcombine.high %v1174_v23, %v1178_v24  ;;  %v927_v37 = vld [vmem:[#allocation10 + $0x10] sm:$0xff] }
 0x35a   :  { %2564 = vmatprep.subr.bf16.mxu0 %v4318_v39  ;;  %2650 = vmatprep.subr.bf16.mxu1 %v4320_v42  ;;  %v4122_v35 = vcombine.high %v927_v37, %v931_v43  ;;  %v4121_v57 = vcombine.low %v927_v37, %v931_v43  ;;  %v976_v43 = vld [vmem:[#allocation10 + $0x198] sm:$0xff] }
 0x35d   :  { %2565 = vmatpush1.bf16.msra.mxu0 %v4317_v47  ;;  %2651 = vmatpush1.bf16.msra.mxu1 %v4319_v48  ;;  %v4365_v48 = vcombine.low %v1173_v20, %v1177_v22  ;;  %v964_v20 = vld [vmem:[#allocation10 + $0x138] sm:$0xff]  ;;  %v4147_v22 = vcombine.low %v952_v12, %v956_v13 }
 0x35e   :  { %2566 = vmatprep.subr.bf16.mxu0 %v4326_v49  ;;  %2652 = vmatprep.subr.bf16.mxu1 %v4328_v50  ;;  %v4367_v49 = vcombine.low %v1174_v23, %v1178_v24 }
 0x361   :  { %2567 = vmatpush1.bf16.msra.mxu0 %v4325_v40  ;;  %2653 = vmatpush1.bf16.msra.mxu1 %v4327_v41  ;;  %v935_v41 = vld [vmem:[#allocation10 + $0x50] sm:$0xff] }
 0x362   :  { %2568 = vmatprep.subr.bf16.mxu0 %v4334_v51  ;;  %2654 = vmatprep.subr.bf16.mxu1 %v4336_v52  ;;  %v939_v52 = vld [vmem:[#allocation10 + $0x70] sm:$0xff] }
 0x363   :  { %v4129_v3 = vcombine.low %v935_v41, %v939_v52 }
 0x365   :  { %2569 = vmatpush1.bf16.msra.mxu0 %v4333_v59  ;;  %2655 = vmatpush1.bf16.msra.mxu1 %v4335_v60  ;;  %v4123_v59 = vcombine.low %v928_v44, %v932_v8  ;;  %v4130_v60 = vcombine.high %v935_v41, %v939_v52  ;;  %v980_v44 = vld [vmem:[#allocation10 + $0x1b8] sm:$0xff]  ;;  %v991_v41 = vld [vmem:[#allocation10 + $0x210] sm:$0xff] }
 0x366   :  { %2570 = vmatprep.subr.bf16.mxu0 %v4342_v62  ;;  %2656 = vmatprep.subr.bf16.mxu1 %v4344_v63  ;;  %v4132_v62 = vcombine.high %v936_v54, %v940_v55  ;;  %v943_v63 = vld [vmem:[#allocation10 + $0x90] sm:$0xff] }
 0x367   :  { %v4137_v14 = vcombine.low %v943_v63, %v947_v0  ;;  %v995_v52 = vld [vmem:[#allocation10 + $0x230] sm:$0xff] }
 0x369   :  { %2571 = vmatpush1.bf16.msra.mxu0 %v4341_v4  ;;  %2657 = vmatpush1.bf16.msra.mxu1 %v4343_v5  ;;  %v4131_v4 = vcombine.low %v936_v54, %v940_v55  ;;  %v4138_v5 = vcombine.high %v943_v63, %v947_v0  ;;  %v992_v54 = vld [vmem:[#allocation10 + $0x218] sm:$0xff]  ;;  %v999_v63 = vld [vmem:[#allocation10 + $0x250] sm:$0xff] }
 0x36a   :  { %2572 = vmatprep.subr.bf16.mxu0 %v4350_v6  ;;  %2658 = vmatprep.subr.bf16.mxu1 %v4352_v7  ;;  %v4140_v6 = vcombine.high %v944_v1, %v948_v2  ;;  %v951_v7 = vld [vmem:[#allocation10 + $0xd0] sm:$0xff]  ;;  %v996_v55 = vld [vmem:[#allocation10 + $0x238] sm:$0xff] }
 0x36b   :  { %v1003_v0 = vld [vmem:[#allocation10 + $0x270] sm:$0xff] }
 0x36d   :  { %v904_v25 = vpop.f32.mrb[12].mxu1  ;;  %2573 = vmatpush1.bf16.msra.mxu0 %v4349_v15  ;;  %2659 = vmatpush1.bf16.msra.mxu1 %v4351_v16  ;;  %v4139_v15 = vcombine.low %v944_v1, %v948_v2  ;;  %v4146_v16 = vcombine.high %v951_v7, %v955_v10  ;;  %v1000_v1 = vld [vmem:[#allocation10 + $0x258] sm:$0xff] }
 0x36e   :  { %v905_v30 = vadd.f32 %v904_v25, %v498_v17  ;;  %v906_v31 = vpop.f32.mrb[13].mxu1  ;;  %2574 = vmatprep.subr.bf16.mxu0 %v4358_v18  ;;  %2660 = vmatprep.subr.bf16.mxu1 %v4360_v19  ;;  %v959_v18 = vld [vmem:[#allocation10 + $0x110] sm:$0xff]  ;;  %v1004_v2 = vld [vmem:[#allocation10 + $0x278] sm:$0xff] }
 0x36f   :  { %v907_v39 = vadd.f32 %v906_v31, %v502_v21  ;;  %v908_v42 = vpop.f32.mrb[14].mxu1  ;;  %v963_v19 = vld [vmem:[#allocation10 + $0x130] sm:$0xff] }
 0x370   :  { %v909_v45 = vadd.f32 %v908_v42, %v498_v17  ;;  %v910_v46 = vpop.f32.mrb[15].mxu1  ;;  %v915_v50 = vmax.f32 %v905_v30, 0.0  ;;  %v4148_v17 = vcombine.high %v952_v12, %v956_v13  ;;  %v4154_v23 = vcombine.high %v959_v18, %v963_v19  ;;  %v967_v25 = vld [vmem:[#allocation10 + $0x150] sm:$0xff]  ;;  %v972_v30 = vld [vmem:[#allocation10 + $0x178] sm:$0xff] }
 0x371   :  { %v911_v47 = vadd.f32 %v910_v46, %v502_v21  ;;  %2575 = vmatpush1.bf16.msra.mxu0 %v4357_v26  ;;  %2661 = vmatpush1.bf16.msra.mxu1 %v4359_v29  ;;  %v916_v38 = vmax.f32 %v907_v39, 0.0  ;;  %v4145_v21 = vcombine.low %v951_v7, %v955_v10  ;;  %v971_v26 = vld [vmem:[#allocation10 + $0x170] sm:$0xff]  ;;  %v968_v29 = vld [vmem:[#allocation10 + $0x158] sm:$0xff]  ;;  %v4153_v31 = vcombine.low %v959_v18, %v963_v19 }
 0x372   :  { %v919_v34 = vmax.f32 %v909_v45, 0.0  ;;  %2576 = vmatprep.subr.bf16.mxu0 %v4366_v32  ;;  %2662 = vmatprep.subr.bf16.mxu1 %v4368_v33  ;;  %v4162_v33 = vcombine.high %v967_v25, %v971_v26  ;;  %v4164_v37 = vcombine.high %v968_v29, %v972_v30  ;;  %v975_v39 = vld [vmem:[#allocation10 + $0x190] sm:$0xff]  ;;  %v4161_v8 = vcombine.low %v967_v25, %v971_v26  ;;  %v1008_v12 = vld [vmem:[#allocation10 + $0x298] sm:$0xff] }
 0x373   :  { %v920_v40 = vmax.f32 %v911_v47, 0.0  ;;  %v979_v42 = vld [vmem:[#allocation10 + $0x1b0] sm:$0xff]  ;;  %v4163_v45 = vcombine.low %v968_v29, %v972_v30  ;;  %v4172_v47 = vcombine.high %v976_v43, %v980_v44  ;;  %v1012_v13 = vld [vmem:[#allocation10 + $0x2b8] sm:$0xff] }
 0x374   :  { %v5435_v51 = vpack.c.bf16 %v919_v34, %v915_v50  ;;  %v4170_v46 = vcombine.high %v975_v39, %v979_v42  ;;  %v984_v50 = vld [vmem:[#allocation10 + $0x1d8] sm:$0xff]  ;;  %v1007_v7 = vld [vmem:[#allocation10 + $0x290] sm:$0xff] }
 0x375   :  { %v5437_v56 = vpack.c.bf16 %v920_v40, %v916_v38  ;;  %2577 = vmatpush1.bf16.msra.mxu0 %v4365_v48  ;;  %2663 = vmatpush1.bf16.msra.mxu1 %v4367_v49  ;;  %v983_v48 = vld [vmem:[#allocation10 + $0x1d0] sm:$0xff]  ;;  %v988_v34 = vld [vmem:[#allocation10 + $0x1f8] sm:$0xff] }
 0x376   :  { %2675 = vmatprep.subr.bf16.mxu0 %v4122_v35  ;;  %2761 = vmatprep.subr.bf16.mxu1 %v4124_v36  ;;  %v987_v49 = vld [vmem:[#allocation10 + $0x1f0] sm:$0xff]  ;;  %v4169_v35 = vcombine.low %v975_v39, %v979_v42  ;;  %v4171_v36 = vcombine.low %v976_v43, %v980_v44  ;;  %v4180_v40 = vcombine.high %v984_v50, %v988_v34  ;;  %v1024_v29 = vld [vmem:[#allocation10 + $0x318] sm:$0xff] }
 0x377   :  { %2578 = vmatprep.mubr.bf16.mxu0 %v5437_v56  ;;  %2664 = vmatprep.mubr.bf16.mxu1 %v5437_v56  ;;  %v4178_v38 = vcombine.high %v983_v48, %v987_v49  ;;  %v1011_v10 = vld [vmem:[#allocation10 + $0x2b0] sm:$0xff]  ;;  %v1028_v30 = vld [vmem:[#allocation10 + $0x338] sm:$0xff] }
 0x378   :  { %2579 = vmatmul.mubr.bf16.vlgmr.msra.gmra.mrb[0].mxu0 %v5435_v51  ;;  %2665 = vmatmul.mubr.bf16.vlgmr.msra.gmra.mrb[16].mxu1 %v5435_v51  ;;  %v1015_v18 = vld [vmem:[#allocation10 + $0x2d0] sm:$0xff]  ;;  %v1032_v43 = vld [vmem:[#allocation10 + $0x358] sm:$0xff] }
 0x379   :  { %2676 = vmatpush1.bf16.msra.mxu0 %v4121_v57  ;;  %2707 = vmatprep.mubr.bf16.mxu0 %v5415_v28  ;;  %v4177_v57 = vcombine.low %v983_v48, %v987_v49  ;;  %v1019_v19 = vld [vmem:[#allocation10 + $0x2f0] sm:$0xff]  ;;  %v1036_v44 = vld [vmem:[#allocation10 + $0x378] sm:$0xff] }
 0x37a   :  { %2762 = vmatpush1.bf16.msra.mxu1 %v4123_v59  ;;  %2793 = vmatprep.mubr.bf16.mxu1 %v5415_v28  ;;  %v960_v28 = vld [vmem:[#allocation10 + $0x118] sm:$0xff]  ;;  %v4179_v59 = vcombine.low %v984_v50, %v988_v34  ;;  %v1023_v25 = vld [vmem:[#allocation10 + $0x310] sm:$0xff] }
 0x37b   :  { %2677 = vmatprep.subr.bf16.mxu0 %v4130_v60  ;;  %2763 = vmatprep.subr.bf16.mxu1 %v4132_v62  ;;  %v4156_v24 = vcombine.high %v960_v28, %v964_v20  ;;  %v4155_v32 = vcombine.low %v960_v28, %v964_v20  ;;  %v4186_v60 = vcombine.high %v991_v41, %v995_v52  ;;  %v1016_v28 = vld [vmem:[#allocation10 + $0x2d8] sm:$0xff]  ;;  %v1027_v26 = vld [vmem:[#allocation10 + $0x330] sm:$0xff] }
 0x37c   :  { %v4188_v62 = vcombine.high %v992_v54, %v996_v55  ;;  %v1020_v20 = vld [vmem:[#allocation10 + $0x2f8] sm:$0xff]  ;;  %v1031_v39 = vld [vmem:[#allocation10 + $0x350] sm:$0xff] }
 0x37d   :  { %2678 = vmatpush1.bf16.msra.mxu0 %v4129_v3  ;;  %v4185_v3 = vcombine.low %v991_v41, %v995_v52  ;;  %v1035_v42 = vld [vmem:[#allocation10 + $0x370] sm:$0xff]  ;;  %v1040_v50 = vld [vmem:[#allocation10 + $0x398] sm:$0xff] }
 0x37e   :  { %2764 = vmatpush1.bf16.msra.mxu1 %v4131_v4  ;;  %2679 = vmatprep.subr.bf16.mxu0 %v4138_v5  ;;  %v4187_v4 = vcombine.low %v992_v54, %v996_v55  ;;  %v4194_v5 = vcombine.high %v999_v63, %v1003_v0  ;;  %v1039_v48 = vld [vmem:[#allocation10 + $0x390] sm:$0xff]  ;;  %v1044_v34 = vld [vmem:[#allocation10 + $0x3b8] sm:$0xff] }
 0x37f   :  { %2765 = vmatprep.subr.bf16.mxu1 %v4140_v6  ;;  %v4196_v6 = vcombine.high %v1000_v1, %v1004_v2  ;;  %v1043_v49 = vld [vmem:[#allocation10 + $0x3b0] sm:$0xff]  ;;  %v1048_v54 = vld [vmem:[#allocation10 + $0x3d8] sm:$0xff] }
 0x380   :  { %v1047_v41 = vld [vmem:[#allocation10 + $0x3d0] sm:$0xff]  ;;  %v1052_v55 = vld [vmem:[#allocation10 + $0x3f8] sm:$0xff] }
 0x381   :  { %2680 = vmatpush1.bf16.msra.mxu0 %v4137_v14  ;;  %v4193_v14 = vcombine.low %v999_v63, %v1003_v0  ;;  %v1051_v52 = vld [vmem:[#allocation10 + $0x3f0] sm:$0xff] }
 0x382   :  { %2766 = vmatpush1.bf16.msra.mxu1 %v4139_v15  ;;  %2681 = vmatprep.subr.bf16.mxu0 %v4146_v16  ;;  %v4195_v15 = vcombine.low %v1000_v1, %v1004_v2  ;;  %v4202_v16 = vcombine.high %v1007_v7, %v1011_v10  ;;  %v1055_v63 = vld [vmem:[#allocation10 + $0x410] sm:$0xff]  ;;  %v1056_v1 = vld [vmem:[#allocation10 + $0x418] sm:$0xff] }
 0x383   :  { %2767 = vmatprep.subr.bf16.mxu1 %v4148_v17  ;;  %v4204_v17 = vcombine.high %v1008_v12, %v1012_v13  ;;  %v1059_v0 = vld [vmem:[#allocation10 + $0x430] sm:$0xff]  ;;  %v1060_v2 = vld [vmem:[#allocation10 + $0x438] sm:$0xff] }
 0x385   :  { %2682 = vmatpush1.bf16.msra.mxu0 %v4145_v21  ;;  %v4201_v21 = vcombine.low %v1007_v7, %v1011_v10  ;;  %v1063_v7 = vld [vmem:[#allocation10 + $0x450] sm:$0xff] }
 0x386   :  { %2768 = vmatpush1.bf16.msra.mxu1 %v4147_v22  ;;  %2683 = vmatprep.subr.bf16.mxu0 %v4154_v23  ;;  %v4203_v22 = vcombine.low %v1008_v12, %v1012_v13  ;;  %v4210_v23 = vcombine.high %v1015_v18, %v1019_v19  ;;  %v1067_v10 = vld [vmem:[#allocation10 + $0x470] sm:$0xff]  ;;  %v4249_v12 = vcombine.low %v1055_v63, %v1059_v0  ;;  %v1064_v13 = vld [vmem:[#allocation10 + $0x458] sm:$0xff] }
 0x387   :  { %2769 = vmatprep.subr.bf16.mxu1 %v4156_v24  ;;  %v4212_v24 = vcombine.high %v1016_v28, %v1020_v20 }
 0x389   :  { %2684 = vmatpush1.bf16.msra.mxu0 %v4153_v31  ;;  %v4209_v31 = vcombine.low %v1015_v18, %v1019_v19  ;;  %v1075_v18 = vld [vmem:[#allocation10 + $0x4b0] sm:$0xff] }
 0x38a   :  { %2770 = vmatpush1.bf16.msra.mxu1 %v4155_v32  ;;  %2685 = vmatprep.subr.bf16.mxu0 %v4162_v33  ;;  %v4211_v32 = vcombine.low %v1016_v28, %v1020_v20  ;;  %v4218_v33 = vcombine.high %v1023_v25, %v1027_v26  ;;  %v1072_v28 = vld [vmem:[#allocation10 + $0x498] sm:$0xff] }
 0x38b   :  { %2771 = vmatprep.subr.bf16.mxu1 %v4164_v37  ;;  %v4220_v37 = vcombine.high %v1024_v29, %v1028_v30  ;;  %v1076_v20 = vld [vmem:[#allocation10 + $0x4b8] sm:$0xff] }
 0x38d   :  { %2686 = vmatpush1.bf16.msra.mxu0 %v4161_v8  ;;  %v4217_v8 = vcombine.low %v1023_v25, %v1027_v26  ;;  %v1079_v25 = vld [vmem:[#allocation10 + $0x4d0] sm:$0xff] }
 0x38e   :  { %2772 = vmatpush1.bf16.msra.mxu1 %v4163_v45  ;;  %2687 = vmatprep.subr.bf16.mxu0 %v4170_v46  ;;  %v4219_v45 = vcombine.low %v1024_v29, %v1028_v30  ;;  %v4226_v46 = vcombine.high %v1031_v39, %v1035_v42  ;;  %v1083_v26 = vld [vmem:[#allocation10 + $0x4f0] sm:$0xff]  ;;  %v1080_v29 = vld [vmem:[#allocation10 + $0x4d8] sm:$0xff] }
 0x38f   :  { %2773 = vmatprep.subr.bf16.mxu1 %v4172_v47  ;;  %v4228_v47 = vcombine.high %v1032_v43, %v1036_v44  ;;  %v1084_v30 = vld [vmem:[#allocation10 + $0x4f8] sm:$0xff] }
 0x391   :  { %2688 = vmatpush1.bf16.msra.mxu0 %v4169_v35  ;;  %v4225_v35 = vcombine.low %v1031_v39, %v1035_v42  ;;  %v1091_v39 = vld [vmem:[#allocation10 + $0x530] sm:$0xff]  ;;  %v1088_v42 = vld [vmem:[#allocation10 + $0x518] sm:$0xff] }
 0x392   :  { %2774 = vmatpush1.bf16.msra.mxu1 %v4171_v36  ;;  %2689 = vmatprep.subr.bf16.mxu0 %v4178_v38  ;;  %v4227_v36 = vcombine.low %v1032_v43, %v1036_v44  ;;  %v4234_v38 = vcombine.high %v1039_v48, %v1043_v49  ;;  %v1092_v43 = vld [vmem:[#allocation10 + $0x538] sm:$0xff]  ;;  %v4275_v44 = vcombine.low %v1080_v29, %v1084_v30 }
 0x393   :  { %2775 = vmatprep.subr.bf16.mxu1 %v4180_v40  ;;  %v4236_v40 = vcombine.high %v1040_v50, %v1044_v34 }
 0x395   :  { %2690 = vmatpush1.bf16.msra.mxu0 %v4177_v57  ;;  %v4233_v57 = vcombine.low %v1039_v48, %v1043_v49  ;;  %v1096_v48 = vld [vmem:[#allocation10 + $0x558] sm:$0xff] }
 0x396   :  { %2776 = vmatpush1.bf16.msra.mxu1 %v4179_v59  ;;  %2691 = vmatprep.subr.bf16.mxu0 %v4186_v60  ;;  %v4235_v59 = vcombine.low %v1040_v50, %v1044_v34  ;;  %v4242_v60 = vcombine.high %v1047_v41, %v1051_v52  ;;  %v1100_v49 = vld [vmem:[#allocation10 + $0x578] sm:$0xff]  ;;  %v4283_v34 = vcombine.low %v1088_v42, %v1092_v43 }
 0x397   :  { %2777 = vmatprep.subr.bf16.mxu1 %v4188_v62  ;;  %v4244_v62 = vcombine.high %v1048_v54, %v1052_v55 }
 0x399   :  { %2692 = vmatpush1.bf16.msra.mxu0 %v4185_v3  ;;  %v4241_v3 = vcombine.low %v1047_v41, %v1051_v52  ;;  %v1104_v41 = vld [vmem:[#allocation10 + $0x598] sm:$0xff] }
 0x39a   :  { %2778 = vmatpush1.bf16.msra.mxu1 %v4187_v4  ;;  %2693 = vmatprep.subr.bf16.mxu0 %v4194_v5  ;;  %v4243_v4 = vcombine.low %v1048_v54, %v1052_v55  ;;  %v4250_v5 = vcombine.high %v1055_v63, %v1059_v0  ;;  %v1108_v52 = vld [vmem:[#allocation10 + $0x5b8] sm:$0xff]  ;;  %v4291_v55 = vcombine.low %v1096_v48, %v1100_v49 }
 0x39b   :  { %2779 = vmatprep.subr.bf16.mxu1 %v4196_v6  ;;  %v4252_v6 = vcombine.high %v1056_v1, %v1060_v2  ;;  %v1112_v63 = vld [vmem:[#allocation10 + $0x5d8] sm:$0xff] }
 0x39c   :  { %v1116_v0 = vld [vmem:[#allocation10 + $0x5f8] sm:$0xff] }
 0x39d   :  { %2694 = vmatpush1.bf16.msra.mxu0 %v4193_v14  ;;  %v1068_v14 = vld [vmem:[#allocation10 + $0x478] sm:$0xff] }
 0x39e   :  { %2780 = vmatpush1.bf16.msra.mxu1 %v4195_v15  ;;  %2695 = vmatprep.subr.bf16.mxu0 %v4202_v16  ;;  %v4251_v15 = vcombine.low %v1056_v1, %v1060_v2  ;;  %v4258_v16 = vcombine.high %v1063_v7, %v1067_v10  ;;  %v4260_v19 = vcombine.high %v1064_v13, %v1068_v14 }
 0x39f   :  { %2781 = vmatprep.subr.bf16.mxu1 %v4204_v17  ;;  %v1071_v17 = vld [vmem:[#allocation10 + $0x490] sm:$0xff]  ;;  %v4299_v2 = vcombine.low %v1104_v41, %v1108_v52 }
 0x3a1   :  { %2696 = vmatpush1.bf16.msra.mxu0 %v4201_v21  ;;  %v4257_v21 = vcombine.low %v1063_v7, %v1067_v10  ;;  %v1120_v7 = vld [vmem:[#allocation10 + $0x618] sm:$0xff] }
 0x3a2   :  { %2782 = vmatpush1.bf16.msra.mxu1 %v4203_v22  ;;  %2697 = vmatprep.subr.bf16.mxu0 %v4210_v23  ;;  %v4259_v22 = vcombine.low %v1064_v13, %v1068_v14  ;;  %v4266_v23 = vcombine.high %v1071_v17, %v1075_v18  ;;  %v1124_v10 = vld [vmem:[#allocation10 + $0x638] sm:$0xff]  ;;  %v4307_v13 = vcombine.low %v1112_v63, %v1116_v0 }
 0x3a3   :  { %2783 = vmatprep.subr.bf16.mxu1 %v4212_v24  ;;  %v4268_v24 = vcombine.high %v1072_v28, %v1076_v20 }
 0x3a5   :  { %2698 = vmatpush1.bf16.msra.mxu0 %v4209_v31  ;;  %v4265_v31 = vcombine.low %v1071_v17, %v1075_v18  ;;  %v1131_v17 = vld [vmem:[#allocation10 + $0x670] sm:$0xff]  ;;  %v1128_v18 = vld [vmem:[#allocation10 + $0x658] sm:$0xff] }
 0x3a6   :  { %2784 = vmatpush1.bf16.msra.mxu1 %v4211_v32  ;;  %2699 = vmatprep.subr.bf16.mxu0 %v4218_v33  ;;  %v4274_v32 = vcombine.high %v1079_v25, %v1083_v26  ;;  %v4276_v33 = vcombine.high %v1080_v29, %v1084_v30 }
 0x3a7   :  { %2785 = vmatprep.subr.bf16.mxu1 %v4220_v37  ;;  %v1087_v37 = vld [vmem:[#allocation10 + $0x510] sm:$0xff] }
 0x3a8   :  { %v4281_v50 = vcombine.low %v1087_v37, %v1091_v39 }
 0x3a9   :  { %2700 = vmatpush1.bf16.msra.mxu0 %v4217_v8  ;;  %v4282_v8 = vcombine.high %v1087_v37, %v1091_v39  ;;  %v1144_v37 = vld [vmem:[#allocation10 + $0x6d8] sm:$0xff] }
 0x3aa   :  { %2786 = vmatpush1.bf16.msra.mxu1 %v4219_v45  ;;  %2701 = vmatprep.subr.bf16.mxu0 %v4226_v46  ;;  %v4284_v45 = vcombine.high %v1088_v42, %v1092_v43  ;;  %v1095_v46 = vld [vmem:[#allocation10 + $0x550] sm:$0xff]  ;;  %v1148_v39 = vld [vmem:[#allocation10 + $0x6f8] sm:$0xff] }
 0x3ab   :  { %2787 = vmatprep.subr.bf16.mxu1 %v4228_v47  ;;  %v1099_v47 = vld [vmem:[#allocation10 + $0x570] sm:$0xff] }
 0x3ac   :  { %v4289_v54 = vcombine.low %v1095_v46, %v1099_v47 }
 0x3ad   :  { %2702 = vmatpush1.bf16.msra.mxu0 %v4225_v35  ;;  %v4290_v35 = vcombine.high %v1095_v46, %v1099_v47  ;;  %v1152_v46 = vld [vmem:[#allocation10 + $0x718] sm:$0xff] }
 0x3ae   :  { %2788 = vmatpush1.bf16.msra.mxu1 %v4227_v36  ;;  %2703 = vmatprep.subr.bf16.mxu0 %v4234_v38  ;;  %v4292_v36 = vcombine.high %v1096_v48, %v1100_v49  ;;  %v1103_v38 = vld [vmem:[#allocation10 + $0x590] sm:$0xff]  ;;  %v1156_v47 = vld [vmem:[#allocation10 + $0x738] sm:$0xff]  ;;  %v4339_v49 = vcombine.low %v1144_v37, %v1148_v39 }
 0x3af   :  { %2789 = vmatprep.subr.bf16.mxu1 %v4236_v40  ;;  %v1107_v40 = vld [vmem:[#allocation10 + $0x5b0] sm:$0xff] }
 0x3b0   :  { %v4297_v1 = vcombine.low %v1103_v38, %v1107_v40 }
 0x3b1   :  { %2704 = vmatpush1.bf16.msra.mxu0 %v4233_v57  ;;  %v4298_v57 = vcombine.high %v1103_v38, %v1107_v40  ;;  %v1160_v38 = vld [vmem:[#allocation10 + $0x758] sm:$0xff] }
 0x3b2   :  { %2790 = vmatpush1.bf16.msra.mxu1 %v4235_v59  ;;  %2705 = vmatprep.subr.bf16.mxu0 %v4242_v60  ;;  %v4300_v59 = vcombine.high %v1104_v41, %v1108_v52  ;;  %v1111_v60 = vld [vmem:[#allocation10 + $0x5d0] sm:$0xff]  ;;  %v1164_v40 = vld [vmem:[#allocation10 + $0x778] sm:$0xff]  ;;  %v4347_v52 = vcombine.low %v1152_v46, %v1156_v47 }
 0x3b3   :  { %2791 = vmatprep.subr.bf16.mxu1 %v4244_v62  ;;  %v1115_v62 = vld [vmem:[#allocation10 + $0x5f0] sm:$0xff] }
 0x3b5   :  { %2706 = vmatpush1.bf16.msra.mxu0 %v4241_v3  ;;  %v4306_v3 = vcombine.high %v1111_v60, %v1115_v62 }
 0x3b6   :  { %2792 = vmatpush1.bf16.msra.mxu1 %v4243_v4  ;;  %2718 = vmatprep.subr.bf16.mxu0 %v4250_v5  ;;  %v4308_v4 = vcombine.high %v1112_v63, %v1116_v0  ;;  %v1119_v5 = vld [vmem:[#allocation10 + $0x610] sm:$0xff]  ;;  %v4355_v0 = vcombine.low %v1160_v38, %v1164_v40 }
 0x3b7   :  { %2804 = vmatprep.subr.bf16.mxu1 %v4252_v6  ;;  %v1123_v6 = vld [vmem:[#allocation10 + $0x630] sm:$0xff] }
 0x3b8   :  { %2708 = vmatmul.mubr.bf16.vlgmr.msra.gmra.mrb[4].mxu0 %v5413_v27  ;;  %v4314_v14 = vcombine.high %v1119_v5, %v1123_v6 }
 0x3b9   :  { %2794 = vmatmul.mubr.bf16.vlgmr.msra.gmra.mrb[20].mxu1 %v5413_v27  ;;  %2719 = vmatpush1.bf16.msra.mxu0 %v4249_v12  ;;  %v4267_v27 = vcombine.low %v1072_v28, %v1076_v20  ;;  %v4305_v12 = vcombine.low %v1111_v60, %v1115_v62  ;;  %v4313_v28 = vcombine.low %v1119_v5, %v1123_v6  ;;  %v1168_v60 = vld [vmem:[#allocation10 + $0x798] sm:$0xff] }
 0x3ba   :  { %2750 = vmatprep.mubr.bf16.mxu0 %v5437_v56  ;;  %2805 = vmatpush1.bf16.msra.mxu1 %v4251_v15  ;;  %v4316_v15 = vcombine.high %v1120_v7, %v1124_v10  ;;  %v4315_v20 = vcombine.low %v1120_v7, %v1124_v10  ;;  %v1172_v62 = vld [vmem:[#allocation10 + $0x7b8] sm:$0xff] }
 0x3bb   :  { %2836 = vmatprep.mubr.bf16.mxu1 %v5437_v56  ;;  %2720 = vmatprep.subr.bf16.mxu0 %v4258_v16  ;;  %v4273_v56 = vcombine.low %v1079_v25, %v1083_v26  ;;  %v1127_v16 = vld [vmem:[#allocation10 + $0x650] sm:$0xff]  ;;  %v1136_v25 = vld [vmem:[#allocation10 + $0x698] sm:$0xff]  ;;  %v4363_v10 = vcombine.low %v1168_v60, %v1172_v62 }
 0x3bc   :  { %2806 = vmatprep.subr.bf16.mxu1 %v4260_v19  ;;  %v1132_v19 = vld [vmem:[#allocation10 + $0x678] sm:$0xff]  ;;  %v4321_v29 = vcombine.low %v1127_v16, %v1131_v17 }
 0x3bd   :  { %2721 = vmatpush1.bf16.msra.mxu0 %v4257_v21  ;;  %v4322_v21 = vcombine.high %v1127_v16, %v1131_v17  ;;  %v1140_v26 = vld [vmem:[#allocation10 + $0x6b8] sm:$0xff]  ;;  %v4323_v30 = vcombine.low %v1128_v18, %v1132_v19  ;;  %v4767_v16 = vld [vmem:[#allocation11 + $0x4] ss:$8 sps:$4 sm:$0xff]   ;;  %v4765_v17 = vld [vmem:[#allocation11] ss:$8 sps:$4 sm:$0xff]  }
 0x3be   :  { %2807 = vmatpush1.bf16.msra.mxu1 %v4259_v22  ;;  %2722 = vmatprep.subr.bf16.mxu0 %v4266_v23  ;;  %v4324_v22 = vcombine.high %v1128_v18, %v1132_v19  ;;  %v1135_v23 = vld [vmem:[#allocation10 + $0x690] sm:$0xff]  ;;  %v4331_v43 = vcombine.low %v1136_v25, %v1140_v26  ;;  %v1176_v5 = vld [vmem:[#allocation10 + $0x7d8] sm:$0xff] }
 0x3bf   :  { %2808 = vmatprep.subr.bf16.mxu1 %v4268_v24  ;;  %v1139_v24 = vld [vmem:[#allocation10 + $0x6b0] sm:$0xff]  ;;  %v1180_v6 = vld [vmem:[#allocation10 + $0x7f8] sm:$0xff] }
 0x3c0   :  { %v4329_v42 = vcombine.low %v1135_v23, %v1139_v24  ;;  %v4770_v18 = vld [vmem:[#allocation11 + $0x14] ss:$8 sps:$4 sm:$0xff]   ;;  %v4768_v19 = vld [vmem:[#allocation11 + $0x10] ss:$8 sps:$4 sm:$0xff]  }
 0x3c1   :  { %2723 = vmatpush1.bf16.msra.mxu0 %v4265_v31  ;;  %v4330_v31 = vcombine.high %v1135_v23, %v1139_v24  ;;  %v4779_v23 = vld [vmem:[#allocation11 + $0x44] ss:$8 sps:$4 sm:$0xff]   ;;  %v4777_v24 = vld [vmem:[#allocation11 + $0x40] ss:$8 sps:$4 sm:$0xff]  }
 0x3c2   :  { %2809 = vmatpush1.bf16.msra.mxu1 %v4267_v27  ;;  %2724 = vmatprep.subr.bf16.mxu0 %v4274_v32  ;;  %v4332_v27 = vcombine.high %v1136_v25, %v1140_v26  ;;  %v1143_v32 = vld [vmem:[#allocation10 + $0x6d0] sm:$0xff] }
 0x3c3   :  { %2810 = vmatprep.subr.bf16.mxu1 %v4276_v33  ;;  %v1147_v33 = vld [vmem:[#allocation10 + $0x6f0] sm:$0xff] }
 0x3c4   :  { %v4337_v48 = vcombine.low %v1143_v32, %v1147_v33  ;;  %v4782_v25 = vld [vmem:[#allocation11 + $0x54] ss:$8 sps:$4 sm:$0xff]   ;;  %v4780_v26 = vld [vmem:[#allocation11 + $0x50] ss:$8 sps:$4 sm:$0xff]  }
 0x3c5   :  { %2725 = vmatpush1.bf16.msra.mxu0 %v4273_v56  ;;  %v4338_v56 = vcombine.high %v1143_v32, %v1147_v33  ;;  %v4789_v32 = vld [vmem:[#allocation11 + $0x80] ss:$8 sps:$4 sm:$0xff]   ;;  %v4794_v33 = vld [vmem:[#allocation11 + $0x94] ss:$8 sps:$4 sm:$0xff]  }
 0x3c6   :  { %2811 = vmatpush1.bf16.msra.mxu1 %v4275_v44  ;;  %2726 = vmatprep.subr.bf16.mxu0 %v4282_v8  ;;  %v4340_v44 = vcombine.high %v1144_v37, %v1148_v39  ;;  %v1151_v8 = vld [vmem:[#allocation10 + $0x710] sm:$0xff]  ;;  %v4797_v39 = vld [vmem:[#allocation11 + $0xa4] ss:$8 sps:$4 sm:$0xff]  }
 0x3c7   :  { %2812 = vmatprep.subr.bf16.mxu1 %v4284_v45  ;;  %v1155_v45 = vld [vmem:[#allocation10 + $0x730] sm:$0xff] }
 0x3c8   :  { %v4345_v41 = vcombine.low %v1151_v8, %v1155_v45  ;;  %v4792_v37 = vld [vmem:[#allocation11 + $0x90] ss:$8 sps:$4 sm:$0xff]  }
 0x3c9   :  { %2727 = vmatpush1.bf16.msra.mxu0 %v4281_v50  ;;  %v4346_v50 = vcombine.high %v1151_v8, %v1155_v45  ;;  %v4801_v8 = vld [vmem:[#allocation11 + $0xc0] ss:$8 sps:$4 sm:$0xff]   ;;  %v4806_v45 = vld [vmem:[#allocation11 + $0xd4] ss:$8 sps:$4 sm:$0xff]  }
 0x3ca   :  { %2813 = vmatpush1.bf16.msra.mxu1 %v4283_v34  ;;  %2728 = vmatprep.subr.bf16.mxu0 %v4290_v35  ;;  %v4348_v34 = vcombine.high %v1152_v46, %v1156_v47  ;;  %v1159_v35 = vld [vmem:[#allocation10 + $0x750] sm:$0xff]  ;;  %v4809_v47 = vld [vmem:[#allocation11 + $0xe4] ss:$8 sps:$4 sm:$0xff]  }
 0x3cb   :  { %2814 = vmatprep.subr.bf16.mxu1 %v4292_v36  ;;  %v1163_v36 = vld [vmem:[#allocation10 + $0x770] sm:$0xff] }
 0x3cc   :  { %v4353_v63 = vcombine.low %v1159_v35, %v1163_v36  ;;  %v4804_v46 = vld [vmem:[#allocation11 + $0xd0] ss:$8 sps:$4 sm:$0xff]  }
 0x3cd   :  { %2729 = vmatpush1.bf16.msra.mxu0 %v4289_v54  ;;  %v4354_v54 = vcombine.high %v1159_v35, %v1163_v36  ;;  %v5454_v35 = vld [vmem:[%s5511_s8] sm:$0xff] }
 0x3ce   :  { %2815 = vmatpush1.bf16.msra.mxu1 %v4291_v55  ;;  %2730 = vmatprep.subr.bf16.mxu0 %v4298_v57  ;;  %v4356_v55 = vcombine.high %v1160_v38, %v1164_v40  ;;  %v1167_v57 = vld [vmem:[#allocation10 + $0x790] sm:$0xff]  ;;  %v1186_v36 = vrot.slane %v5454_v35, %v5374_v58  ;;  %v1194_v38 = vrot.slane %v5454_v35, %v497_v9 }
 0x3cf   :  { %2816 = vmatprep.subr.bf16.mxu1 %v4300_v59  ;;  %v1171_v59 = vld [vmem:[#allocation10 + $0x7b0] sm:$0xff]  ;;  %v1190_v40 = vrot.slane %v5454_v35, %v5380_v61 }
 0x3d0   :  { %v4361_v7 = vcombine.low %v1167_v57, %v1171_v59 }
 0x3d1   :  { %2731 = vmatpush1.bf16.msra.mxu0 %v4297_v1  ;;  %v4362_v1 = vcombine.high %v1167_v57, %v1171_v59 }
 0x3d2   :  { %2817 = vmatpush1.bf16.msra.mxu1 %v4299_v2  ;;  %2732 = vmatprep.subr.bf16.mxu0 %v4306_v3  ;;  %v4364_v2 = vcombine.high %v1168_v60, %v1172_v62  ;;  %v1175_v3 = vld [vmem:[#allocation10 + $0x7d0] sm:$0xff] }
 0x3d3   :  { %2818 = vmatprep.subr.bf16.mxu1 %v4308_v4  ;;  %v1179_v4 = vld [vmem:[#allocation10 + $0x7f0] sm:$0xff] }
 0x3d5   :  { %2733 = vmatpush1.bf16.msra.mxu0 %v4305_v12  ;;  %v4370_v12 = vcombine.high %v1175_v3, %v1179_v4 }
 0x3d6   :  { %2819 = vmatpush1.bf16.msra.mxu1 %v4307_v13  ;;  %2734 = vmatprep.subr.bf16.mxu0 %v4314_v14  ;;  %v4372_v13 = vcombine.high %v1176_v5, %v1180_v6  ;;  %v4369_v14 = vcombine.low %v1175_v3, %v1179_v4 }
 0x3d7   :  { %2820 = vmatprep.subr.bf16.mxu1 %v4316_v15  ;;  %v4371_v15 = vcombine.low %v1176_v5, %v1180_v6 }
 0x3d9   :  { %2735 = vmatpush1.bf16.msra.mxu0 %v4313_v28  ;;  %v4773_v28 = vld [vmem:[#allocation11 + $0x24] ss:$8 sps:$4 sm:$0xff]  }
 0x3da   :  { %2821 = vmatpush1.bf16.msra.mxu1 %v4315_v20  ;;  %2736 = vmatprep.subr.bf16.mxu0 %v4322_v21  ;;  %v4771_v20 = vld [vmem:[#allocation11 + $0x20] ss:$8 sps:$4 sm:$0xff]   ;;  %v4776_v21 = vld [vmem:[#allocation11 + $0x34] ss:$8 sps:$4 sm:$0xff]  }
 0x3db   :  { %2822 = vmatprep.subr.bf16.mxu1 %v4324_v22  ;;  %v4774_v22 = vld [vmem:[#allocation11 + $0x30] ss:$8 sps:$4 sm:$0xff]  }
 0x3dd   :  { %2737 = vmatpush1.bf16.msra.mxu0 %v4321_v29  ;;  %v4783_v29 = vld [vmem:[#allocation11 + $0x60] ss:$8 sps:$4 sm:$0xff]  }
 0x3de   :  { %2823 = vmatpush1.bf16.msra.mxu1 %v4323_v30  ;;  %2738 = vmatprep.subr.bf16.mxu0 %v4330_v31  ;;  %v4788_v30 = vld [vmem:[#allocation11 + $0x74] ss:$8 sps:$4 sm:$0xff]   ;;  %v4786_v31 = vld [vmem:[#allocation11 + $0x70] ss:$8 sps:$4 sm:$0xff]  }
 0x3df   :  { %2824 = vmatprep.subr.bf16.mxu1 %v4332_v27  ;;  %v4791_v27 = vld [vmem:[#allocation11 + $0x84] ss:$8 sps:$4 sm:$0xff]  }
 0x3e1   :  { %2739 = vmatpush1.bf16.msra.mxu0 %v4329_v42  ;;  %v4795_v42 = vld [vmem:[#allocation11 + $0xa0] ss:$8 sps:$4 sm:$0xff]  }
 0x3e2   :  { %2825 = vmatpush1.bf16.msra.mxu1 %v4331_v43  ;;  %2740 = vmatprep.subr.bf16.mxu0 %v4338_v56  ;;  %v4800_v43 = vld [vmem:[#allocation11 + $0xb4] ss:$8 sps:$4 sm:$0xff]   ;;  %v4798_v56 = vld [vmem:[#allocation11 + $0xb0] ss:$8 sps:$4 sm:$0xff]  }
 0x3e3   :  { %2826 = vmatprep.subr.bf16.mxu1 %v4340_v44  ;;  %v4803_v44 = vld [vmem:[#allocation11 + $0xc4] ss:$8 sps:$4 sm:$0xff]  }
 0x3e5   :  { %2741 = vmatpush1.bf16.msra.mxu0 %v4337_v48  ;;  %v4807_v48 = vld [vmem:[#allocation11 + $0xe0] ss:$8 sps:$4 sm:$0xff]  }
 0x3e6   :  { %2827 = vmatpush1.bf16.msra.mxu1 %v4339_v49  ;;  %2742 = vmatprep.subr.bf16.mxu0 %v4346_v50  ;;  %v4812_v49 = vld [vmem:[#allocation11 + $0xf4] ss:$8 sps:$4 sm:$0xff]   ;;  %v4810_v50 = vld [vmem:[#allocation11 + $0xf0] ss:$8 sps:$4 sm:$0xff]  }
 0x3e7   :  { %2828 = vmatprep.subr.bf16.mxu1 %v4348_v34  ;;  %v4815_v34 = vld [vmem:[#allocation11 + $0x104] ss:$8 sps:$4 sm:$0xff]  }
 0x3e9   :  { %2743 = vmatpush1.bf16.msra.mxu0 %v4345_v41  ;;  %v1198_v41 = vrot.slane %v5454_v35, %v501_v11 }
 0x3ea   :  { %2829 = vmatpush1.bf16.msra.mxu1 %v4347_v52  ;;  %2744 = vmatprep.subr.bf16.mxu0 %v4354_v54 }
 0x3eb   :  { %2830 = vmatprep.subr.bf16.mxu1 %v4356_v55 }
 0x3ed   :  { %2745 = vmatpush1.bf16.msra.mxu0 %v4353_v63 }
 0x3ee   :  { %2831 = vmatpush1.bf16.msra.mxu1 %v4355_v0  ;;  %2746 = vmatprep.subr.bf16.mxu0 %v4362_v1 }
 0x3ef   :  { %2832 = vmatprep.subr.bf16.mxu1 %v4364_v2 }
 0x3f1   :  { %2747 = vmatpush1.bf16.msra.mxu0 %v4361_v7 }
 0x3f2   :  { %2833 = vmatpush1.bf16.msra.mxu1 %v4363_v10  ;;  %2748 = vmatprep.subr.bf16.mxu0 %v4370_v12 }
 0x3f3   :  { %2834 = vmatprep.subr.bf16.mxu1 %v4372_v13 }
 0x3f5   :  { %2749 = vmatpush1.bf16.msra.mxu0 %v4369_v14 }
 0x3f6   :  { %2835 = vmatpush1.bf16.msra.mxu1 %v4371_v15  ;;  %3651 = vmatprep.subr.bf16.mxu0 %v4767_v16 }
 0x3f8   :  { %2751 = vmatmul.mubr.bf16.vlgmr.msra.gmra.mrb[4].mxu0 %v5435_v51 }
 0x3f9   :  { %2837 = vmatmul.mubr.bf16.vlgmr.msra.gmra.mrb[20].mxu1 %v5435_v51  ;;  %3652 = vmatpush1.bf16.msra.mxu0 %v4765_v17  ;;  %v4785_v51 = vld [vmem:[#allocation11 + $0x64] ss:$8 sps:$4 sm:$0xff]  }
 0x3fa   :  { %3653 = vmatprep.subr.bf16.mxu0 %v4770_v18 }
 0x3fd   :  { %3654 = vmatpush1.bf16.msra.mxu0 %v4768_v19 }
 0x3fe   :  { %3655 = vmatprep.subr.bf16.mxu0 %v4773_v28 }
 0x401   :  { %3656 = vmatpush1.bf16.msra.mxu0 %v4771_v20  ;;  %v4813_v20 = vld [vmem:[#allocation11 + $0x100] ss:$8 sps:$4 sm:$0xff]  }
 0x402   :  { %3657 = vmatprep.subr.bf16.mxu0 %v4776_v21  ;;  %v4818_v21 = vld [vmem:[#allocation11 + $0x114] ss:$8 sps:$4 sm:$0xff]  }
 0x405   :  { %3658 = vmatpush1.bf16.msra.mxu0 %v4774_v22  ;;  %v4816_v22 = vld [vmem:[#allocation11 + $0x110] ss:$8 sps:$4 sm:$0xff]  }
 0x406   :  { %3659 = vmatprep.subr.bf16.mxu0 %v4779_v23  ;;  %v4821_v23 = vld [vmem:[#allocation11 + $0x124] ss:$8 sps:$4 sm:$0xff]  }
 0x409   :  { %3660 = vmatpush1.bf16.msra.mxu0 %v4777_v24  ;;  %v4819_v24 = vld [vmem:[#allocation11 + $0x120] ss:$8 sps:$4 sm:$0xff]  }
 0x40a   :  { %3661 = vmatprep.subr.bf16.mxu0 %v4782_v25  ;;  %v4824_v25 = vld [vmem:[#allocation11 + $0x134] ss:$8 sps:$4 sm:$0xff]  }
 0x40d   :  { %3662 = vmatpush1.bf16.msra.mxu0 %v4780_v26  ;;  %v4822_v26 = vld [vmem:[#allocation11 + $0x130] ss:$8 sps:$4 sm:$0xff]  }
 0x40e   :  { %3663 = vmatprep.subr.bf16.mxu0 %v4785_v51  ;;  %v4827_v51 = vld [vmem:[#allocation11 + $0x144] ss:$8 sps:$4 sm:$0xff]  }
 0x411   :  { %3664 = vmatpush1.bf16.msra.mxu0 %v4783_v29  ;;  %v4825_v29 = vld [vmem:[#allocation11 + $0x140] ss:$8 sps:$4 sm:$0xff]  }
 0x412   :  { %3665 = vmatprep.subr.bf16.mxu0 %v4788_v30  ;;  %v4830_v30 = vld [vmem:[#allocation11 + $0x154] ss:$8 sps:$4 sm:$0xff]  }
 0x415   :  { %3666 = vmatpush1.bf16.msra.mxu0 %v4786_v31  ;;  %v4828_v31 = vld [vmem:[#allocation11 + $0x150] ss:$8 sps:$4 sm:$0xff]  }
 0x416   :  { %3667 = vmatprep.subr.bf16.mxu0 %v4791_v27  ;;  %v4833_v27 = vld [vmem:[#allocation11 + $0x164] ss:$8 sps:$4 sm:$0xff]  }
 0x419   :  { %3668 = vmatpush1.bf16.msra.mxu0 %v4789_v32  ;;  %v4831_v32 = vld [vmem:[#allocation11 + $0x160] ss:$8 sps:$4 sm:$0xff]  }
 0x41a   :  { %3669 = vmatprep.subr.bf16.mxu0 %v4794_v33  ;;  %v4836_v33 = vld [vmem:[#allocation11 + $0x174] ss:$8 sps:$4 sm:$0xff]  }
 0x41d   :  { %3670 = vmatpush1.bf16.msra.mxu0 %v4792_v37  ;;  %v4834_v37 = vld [vmem:[#allocation11 + $0x170] ss:$8 sps:$4 sm:$0xff]  }
 0x41e   :  { %3671 = vmatprep.subr.bf16.mxu0 %v4797_v39  ;;  %v4839_v39 = vld [vmem:[#allocation11 + $0x184] ss:$8 sps:$4 sm:$0xff]  }
 0x421   :  { %3672 = vmatpush1.bf16.msra.mxu0 %v4795_v42  ;;  %v4837_v42 = vld [vmem:[#allocation11 + $0x180] ss:$8 sps:$4 sm:$0xff]  }
 0x422   :  { %3673 = vmatprep.subr.bf16.mxu0 %v4800_v43  ;;  %v4842_v43 = vld [vmem:[#allocation11 + $0x194] ss:$8 sps:$4 sm:$0xff]  }
 0x425   :  { %3674 = vmatpush1.bf16.msra.mxu0 %v4798_v56  ;;  %v4840_v56 = vld [vmem:[#allocation11 + $0x190] ss:$8 sps:$4 sm:$0xff]  }
 0x426   :  { %3675 = vmatprep.subr.bf16.mxu0 %v4803_v44  ;;  %v4845_v44 = vld [vmem:[#allocation11 + $0x1a4] ss:$8 sps:$4 sm:$0xff]  }
 0x429   :  { %3676 = vmatpush1.bf16.msra.mxu0 %v4801_v8  ;;  %v4843_v8 = vld [vmem:[#allocation11 + $0x1a0] ss:$8 sps:$4 sm:$0xff]  }
 0x42a   :  { %3677 = vmatprep.subr.bf16.mxu0 %v4806_v45  ;;  %v4848_v45 = vld [vmem:[#allocation11 + $0x1b4] ss:$8 sps:$4 sm:$0xff]  }
 0x42d   :  { %3678 = vmatpush1.bf16.msra.mxu0 %v4804_v46  ;;  %v4846_v46 = vld [vmem:[#allocation11 + $0x1b0] ss:$8 sps:$4 sm:$0xff]  }
 0x42e   :  { %3679 = vmatprep.subr.bf16.mxu0 %v4809_v47  ;;  %v4851_v47 = vld [vmem:[#allocation11 + $0x1c4] ss:$8 sps:$4 sm:$0xff]  }
 0x431   :  { %3680 = vmatpush1.bf16.msra.mxu0 %v4807_v48  ;;  %v4849_v48 = vld [vmem:[#allocation11 + $0x1c0] ss:$8 sps:$4 sm:$0xff]  }
 0x432   :  { %3681 = vmatprep.subr.bf16.mxu0 %v4812_v49  ;;  %v4854_v49 = vld [vmem:[#allocation11 + $0x1d4] ss:$8 sps:$4 sm:$0xff]  }
 0x435   :  { %3682 = vmatpush1.bf16.msra.mxu0 %v4810_v50  ;;  %v4852_v50 = vld [vmem:[#allocation11 + $0x1d0] ss:$8 sps:$4 sm:$0xff]  }
 0x436   :  { %3694 = vmatprep.subr.bf16.mxu0 %v4815_v34  ;;  %v4857_v34 = vld [vmem:[#allocation11 + $0x1e4] ss:$8 sps:$4 sm:$0xff]  }
 0x44b   :  { %v2580_v52 = vpop.f32.mrb[0].mxu0  ;;  %v2666_v54 = vpop.f32.mrb[16].mxu1 }
 0x44c   :  { %v4569_v55 = vadd.f32 %v2580_v52, %v1186_v36  ;;  %v4573_v57 = vadd.f32 %v2666_v54, %v1194_v38  ;;  %v2582_v59 = vpop.f32.mrb[1].mxu0  ;;  %v2668_v60 = vpop.f32.mrb[17].mxu1  ;;  %v4861_v52 = vld [vmem:[#allocation11 + $0x200] ss:$8 sps:$4 sm:$0xff]   ;;  %v4866_v54 = vld [vmem:[#allocation11 + $0x214] ss:$8 sps:$4 sm:$0xff]  }
 0x44d   :  { %v4570_v62 = vadd.f32 %v2582_v59, %v1190_v40  ;;  %v4574_v63 = vadd.f32 %v2668_v60, %v1198_v41  ;;  %v2584_v0 = vpop.f32.mrb[2].mxu0  ;;  %v2670_v1 = vpop.f32.mrb[18].mxu1  ;;  %v4959_v59 = vld [vmem:[#allocation13 + $0x48] sm:$0xff]   ;;  %v4864_v60 = vld [vmem:[#allocation11 + $0x210] ss:$8 sps:$4 sm:$0xff]  }
 0x44e   :  { %v4571_v2 = vadd.f32 %v2584_v0, %v1186_v36  ;;  %v4575_v3 = vadd.f32 %v2670_v1, %v1194_v38  ;;  %v2586_v9 = vpop.f32.mrb[3].mxu0  ;;  %v2672_v4 = vpop.f32.mrb[19].mxu1  ;;  %v2847_v7 = vmax.f32 %v4569_v55, 0.0  ;;  %v2849_v10 = vmax.f32 %v4573_v57, 0.0  ;;  %v4855_v36 = vld [vmem:[#allocation11 + $0x1e0] ss:$8 sps:$4 sm:$0xff]  }
 0x44f   :  { %v4572_v5 = vadd.f32 %v2586_v9, %v1190_v40  ;;  %v4576_v6 = vadd.f32 %v2672_v4, %v1198_v41  ;;  %v2848_v13 = vmax.f32 %v4570_v62, 0.0  ;;  %v2850_v14 = vmax.f32 %v4574_v63, 0.0  ;;  %v4860_v38 = vld [vmem:[#allocation11 + $0x1f4] ss:$8 sps:$4 sm:$0xff]   ;;  %v4858_v40 = vld [vmem:[#allocation11 + $0x1f0] ss:$8 sps:$4 sm:$0xff]  }
 0x450   :  { %v2855_v12 = vmax.f32 %v4571_v2, 0.0  ;;  %v2857_v11 = vmax.f32 %v4575_v3, 0.0  ;;  %v4863_v41 = vld [vmem:[#allocation11 + $0x204] ss:$8 sps:$4 sm:$0xff]   ;;  %v4961_v0 = vld [vmem:[#allocation13 + $0x50] sm:$0xff]   ;;  %v4963_v9 = vld [vmem:[#allocation13 + $0x58] sm:$0xff]  }
 0x451   :  { %v2856_v15 = vmax.f32 %v4572_v5, 0.0  ;;  %v2858_v16 = vmax.f32 %v4576_v6, 0.0  ;;  %v4957_v55 = vld [vmem:[#allocation13 + $0x40] sm:$0xff]   ;;  %v4960_v63 = vld [vmem:[#allocation13 + $0x8] sm:$0xff]   ;;  %v4872_v2 = vld [vmem:[#allocation11 + $0x234] ss:$8 sps:$4 sm:$0xff]  }
 0x452   :  { %v2863_v17 = vpack.c.bf16 %v2855_v12, %v2847_v7  ;;  %v5466_v18 = vpack.c.bf16 %v2857_v11, %v2849_v10  ;;  %v4958_v57 = vld [vmem:[#allocation13] sm:$0xff]   ;;  %4527 = vmatprep.subr.bf16.mxu1 %v4957_v55  ;;  %v4962_v3 = vld [vmem:[#allocation13 + $0x10] sm:$0xff]   ;;  %v4964_v6 = vld [vmem:[#allocation13 + $0x18] sm:$0xff]  }
 0x453   :  { %v2864_v19 = vpack.c.bf16 %v2856_v15, %v2848_v13  ;;  %v2866_v28 = vpack.c.bf16 %v2858_v16, %v2850_v14  ;;  %v4869_v62 = vld [vmem:[#allocation11 + $0x224] ss:$8 sps:$4 sm:$0xff]   ;;  %4528 = vmatpush3.bf16.msra.mxu1 %v4958_v57  ;;  %v4867_v1 = vld [vmem:[#allocation11 + $0x220] ss:$8 sps:$4 sm:$0xff]   ;;  %v4870_v4 = vld [vmem:[#allocation11 + $0x230] ss:$8 sps:$4 sm:$0xff]  }
 0x454   :  { %4529 = vmatprep.subr.bf16.mxu1 %v4959_v59  ;;  %v4875_v5 = vld [vmem:[#allocation11 + $0x244] ss:$8 sps:$4 sm:$0xff]   ;;  %v4873_v10 = vld [vmem:[#allocation11 + $0x240] ss:$8 sps:$4 sm:$0xff]   ;;  %v4878_v12 = vld [vmem:[#allocation11 + $0x254] ss:$8 sps:$4 sm:$0xff]  }
 0x455   :  { %3683 = vmatprep.mubr.bf16.mxu0 %v2864_v19  ;;  %v4965_v7 = vld [vmem:[#allocation13 + $0x60] sm:$0xff]   ;;  %v4967_v13 = vld [vmem:[#allocation13 + $0x68] sm:$0xff]   ;;  %v4876_v14 = vld [vmem:[#allocation11 + $0x250] ss:$8 sps:$4 sm:$0xff]  }
 0x456   :  { %3684 = vmatmul.mubr.bf16.vlgmr.msra.gmra.mrb[8].mxu0 %v2863_v17  ;;  %v4966_v11 = vld [vmem:[#allocation13 + $0x20] sm:$0xff]   ;;  %v4884_v17 = vld [vmem:[#allocation11 + $0x274] ss:$8 sps:$4 sm:$0xff]  }
 0x457   :  { %3695 = vmatpush1.bf16.msra.mxu0 %v4813_v20  ;;  %3726 = vmatprep.mubr.bf16.mxu0 %v2866_v28  ;;  %v4881_v15 = vld [vmem:[#allocation11 + $0x264] ss:$8 sps:$4 sm:$0xff]   ;;  %v4879_v16 = vld [vmem:[#allocation11 + $0x260] ss:$8 sps:$4 sm:$0xff]   ;;  %v4890_v20 = vld [vmem:[#allocation11 + $0x294] ss:$8 sps:$4 sm:$0xff]  }
 0x458   :  { %3696 = vmatprep.subr.bf16.mxu0 %v4818_v21  ;;  %4530 = vmatpush3.bf16.msra.mxu1 %v4960_v63  ;;  %v4887_v19 = vld [vmem:[#allocation11 + $0x284] ss:$8 sps:$4 sm:$0xff]   ;;  %v4885_v28 = vld [vmem:[#allocation11 + $0x280] ss:$8 sps:$4 sm:$0xff]   ;;  %v4888_v21 = vld [vmem:[#allocation11 + $0x290] ss:$8 sps:$4 sm:$0xff]  }
 0x459   :  { %4531 = vmatprep.subr.bf16.mxu1 %v4961_v0 }
 0x45b   :  { %3697 = vmatpush1.bf16.msra.mxu0 %v4816_v22  ;;  %v4893_v22 = vld [vmem:[#allocation11 + $0x2a4] ss:$8 sps:$4 sm:$0xff]  }
 0x45c   :  { %3698 = vmatprep.subr.bf16.mxu0 %v4821_v23  ;;  %4532 = vmatpush3.bf16.msra.mxu1 %v4962_v3  ;;  %v4891_v23 = vld [vmem:[#allocation11 + $0x2a0] ss:$8 sps:$4 sm:$0xff]  }
 0x45d   :  { %4533 = vmatprep.subr.bf16.mxu1 %v4963_v9 }
 0x45f   :  { %3699 = vmatpush1.bf16.msra.mxu0 %v4819_v24  ;;  %v4896_v24 = vld [vmem:[#allocation11 + $0x2b4] ss:$8 sps:$4 sm:$0xff]  }
 0x460   :  { %3700 = vmatprep.subr.bf16.mxu0 %v4824_v25  ;;  %4534 = vmatpush3.bf16.msra.mxu1 %v4964_v6  ;;  %v4894_v25 = vld [vmem:[#allocation11 + $0x2b0] ss:$8 sps:$4 sm:$0xff]  }
 0x461   :  { %4535 = vmatprep.subr.bf16.mxu1 %v4965_v7  ;;  %v4909_v7 = vld [vmem:[#allocation11 + $0x300] ss:$8 sps:$4 sm:$0xff]  }
 0x463   :  { %3701 = vmatpush1.bf16.msra.mxu0 %v4822_v26  ;;  %v4899_v26 = vld [vmem:[#allocation11 + $0x2c4] ss:$8 sps:$4 sm:$0xff]  }
 0x464   :  { %3702 = vmatprep.subr.bf16.mxu0 %v4827_v51  ;;  %4536 = vmatpush3.bf16.msra.mxu1 %v4966_v11  ;;  %v4897_v51 = vld [vmem:[#allocation11 + $0x2c0] ss:$8 sps:$4 sm:$0xff]   ;;  %v4912_v11 = vld [vmem:[#allocation11 + $0x310] ss:$8 sps:$4 sm:$0xff]  }
 0x465   :  { %4537 = vmatprep.subr.bf16.mxu1 %v4967_v13  ;;  %v4917_v13 = vld [vmem:[#allocation11 + $0x324] ss:$8 sps:$4 sm:$0xff]  }
 0x467   :  { %3703 = vmatpush1.bf16.msra.mxu0 %v4825_v29  ;;  %v4902_v29 = vld [vmem:[#allocation11 + $0x2d4] ss:$8 sps:$4 sm:$0xff]  }
 0x468   :  { %3704 = vmatprep.subr.bf16.mxu0 %v4830_v30  ;;  %v1201_v30 = vsub.s32 4, %v5371_v53 }
 0x46b   :  { %3705 = vmatpush1.bf16.msra.mxu0 %v4828_v31  ;;  %v1209_v31 = vsub.s32 6, %v5371_v53 }
 0x46c   :  { %3706 = vmatprep.subr.bf16.mxu0 %v4833_v27  ;;  %v1205_v27 = vsub.s32 5, %v5371_v53 }
 0x46f   :  { %3707 = vmatpush1.bf16.msra.mxu0 %v4831_v32  ;;  %v1213_v32 = vsub.s32 7, %v5371_v53  ;;  %v4908_v53 = vld [vmem:[#allocation11 + $0x2f4] ss:$8 sps:$4 sm:$0xff]  }
 0x470   :  { %3708 = vmatprep.subr.bf16.mxu0 %v4836_v33  ;;  %v4900_v33 = vld [vmem:[#allocation11 + $0x2d0] ss:$8 sps:$4 sm:$0xff]  }
 0x473   :  { %3709 = vmatpush1.bf16.msra.mxu0 %v4834_v37  ;;  %v1202_v37 = vrot.slane %v5454_v35, %v1201_v30  ;;  %v4939_v30 = vld [vmem:[#allocation11 + $0x3a0] ss:$8 sps:$4 sm:$0xff]  }
 0x474   :  { %3710 = vmatprep.subr.bf16.mxu0 %v4839_v39  ;;  %v4905_v39 = vld [vmem:[#allocation11 + $0x2e4] ss:$8 sps:$4 sm:$0xff]  }
 0x477   :  { %3711 = vmatpush1.bf16.msra.mxu0 %v4837_v42  ;;  %v1210_v42 = vrot.slane %v5454_v35, %v1209_v31  ;;  %v4944_v31 = vld [vmem:[#allocation11 + $0x3b4] ss:$8 sps:$4 sm:$0xff]  }
 0x478   :  { %3712 = vmatprep.subr.bf16.mxu0 %v4842_v43  ;;  %v1206_v43 = vrot.slane %v5454_v35, %v1205_v27  ;;  %v4942_v27 = vld [vmem:[#allocation11 + $0x3b0] ss:$8 sps:$4 sm:$0xff]  }
 0x47b   :  { %3713 = vmatpush1.bf16.msra.mxu0 %v4840_v56  ;;  %v1214_v56 = vrot.slane %v5454_v35, %v1213_v32  ;;  %v4906_v35 = vld [vmem:[#allocation11 + $0x2f0] ss:$8 sps:$4 sm:$0xff]   ;;  %v4947_v32 = vld [vmem:[#allocation11 + $0x3c4] ss:$8 sps:$4 sm:$0xff]  }
 0x47c   :  { %3714 = vmatprep.subr.bf16.mxu0 %v4845_v44 }
 0x47f   :  { %3715 = vmatpush1.bf16.msra.mxu0 %v4843_v8  ;;  %v4903_v8 = vld [vmem:[#allocation11 + $0x2e0] ss:$8 sps:$4 sm:$0xff]  }
 0x480   :  { %3716 = vmatprep.subr.bf16.mxu0 %v4848_v45 }
 0x483   :  { %3717 = vmatpush1.bf16.msra.mxu0 %v4846_v46 }
 0x484   :  { %3718 = vmatprep.subr.bf16.mxu0 %v4851_v47 }
 0x487   :  { %3719 = vmatpush1.bf16.msra.mxu0 %v4849_v48 }
 0x488   :  { %3720 = vmatprep.subr.bf16.mxu0 %v4854_v49 }
 0x48b   :  { %3721 = vmatpush1.bf16.msra.mxu0 %v4852_v50 }
 0x48c   :  { %3722 = vmatprep.subr.bf16.mxu0 %v4857_v34 }
 0x48f   :  { %3723 = vmatpush1.bf16.msra.mxu0 %v4855_v36 }
 0x490   :  { %3724 = vmatprep.subr.bf16.mxu0 %v4860_v38 }
 0x493   :  { %3725 = vmatpush1.bf16.msra.mxu0 %v4858_v40 }
 0x494   :  { %3737 = vmatprep.subr.bf16.mxu0 %v4863_v41 }
 0x496   :  { %3727 = vmatmul.mubr.bf16.vlgmr.msra.gmra.mrb[8].mxu0 %v5466_v18  ;;  %v4882_v18 = vld [vmem:[#allocation11 + $0x270] ss:$8 sps:$4 sm:$0xff]  }
 0x497   :  { %3738 = vmatpush1.bf16.msra.mxu0 %v4861_v52 }
 0x498   :  { %3739 = vmatprep.subr.bf16.mxu0 %v4866_v54 }
 0x49b   :  { %3740 = vmatpush1.bf16.msra.mxu0 %v4864_v60 }
 0x49c   :  { %3741 = vmatprep.subr.bf16.mxu0 %v4869_v62  ;;  %v4911_v62 = vld [vmem:[#allocation11 + $0x304] ss:$8 sps:$4 sm:$0xff]  }
 0x49f   :  { %3742 = vmatpush1.bf16.msra.mxu0 %v4867_v1 }
 0x4a0   :  { %3743 = vmatprep.subr.bf16.mxu0 %v4872_v2 }
 0x4a3   :  { %3744 = vmatpush1.bf16.msra.mxu0 %v4870_v4 }
 0x4a4   :  { %3745 = vmatprep.subr.bf16.mxu0 %v4875_v5 }
 0x4a7   :  { %3746 = vmatpush1.bf16.msra.mxu0 %v4873_v10 }
 0x4a8   :  { %3747 = vmatprep.subr.bf16.mxu0 %v4878_v12  ;;  %v4914_v12 = vld [vmem:[#allocation11 + $0x314] ss:$8 sps:$4 sm:$0xff]  }
 0x4ab   :  { %3748 = vmatpush1.bf16.msra.mxu0 %v4876_v14  ;;  %v4915_v14 = vld [vmem:[#allocation11 + $0x320] ss:$8 sps:$4 sm:$0xff]  }
 0x4ac   :  { %3749 = vmatprep.subr.bf16.mxu0 %v4881_v15  ;;  %v4920_v15 = vld [vmem:[#allocation11 + $0x334] ss:$8 sps:$4 sm:$0xff]  }
 0x4af   :  { %3750 = vmatpush1.bf16.msra.mxu0 %v4879_v16  ;;  %v4918_v16 = vld [vmem:[#allocation11 + $0x330] ss:$8 sps:$4 sm:$0xff]  }
 0x4b0   :  { %3751 = vmatprep.subr.bf16.mxu0 %v4884_v17  ;;  %v4923_v17 = vld [vmem:[#allocation11 + $0x344] ss:$8 sps:$4 sm:$0xff]  }
 0x4b3   :  { %3752 = vmatpush1.bf16.msra.mxu0 %v4882_v18  ;;  %v4921_v18 = vld [vmem:[#allocation11 + $0x340] ss:$8 sps:$4 sm:$0xff]  }
 0x4b4   :  { %3753 = vmatprep.subr.bf16.mxu0 %v4887_v19  ;;  %v4926_v19 = vld [vmem:[#allocation11 + $0x354] ss:$8 sps:$4 sm:$0xff]  }
 0x4b7   :  { %3754 = vmatpush1.bf16.msra.mxu0 %v4885_v28  ;;  %v4924_v28 = vld [vmem:[#allocation11 + $0x350] ss:$8 sps:$4 sm:$0xff]  }
 0x4b8   :  { %3755 = vmatprep.subr.bf16.mxu0 %v4890_v20  ;;  %v4929_v20 = vld [vmem:[#allocation11 + $0x364] ss:$8 sps:$4 sm:$0xff]  }
 0x4bb   :  { %3756 = vmatpush1.bf16.msra.mxu0 %v4888_v21  ;;  %v4927_v21 = vld [vmem:[#allocation11 + $0x360] ss:$8 sps:$4 sm:$0xff]  }
 0x4bc   :  { %3757 = vmatprep.subr.bf16.mxu0 %v4893_v22  ;;  %v4932_v22 = vld [vmem:[#allocation11 + $0x374] ss:$8 sps:$4 sm:$0xff]  }
 0x4bf   :  { %3758 = vmatpush1.bf16.msra.mxu0 %v4891_v23  ;;  %v4930_v23 = vld [vmem:[#allocation11 + $0x370] ss:$8 sps:$4 sm:$0xff]  }
 0x4c0   :  { %3759 = vmatprep.subr.bf16.mxu0 %v4896_v24  ;;  %v4935_v24 = vld [vmem:[#allocation11 + $0x384] ss:$8 sps:$4 sm:$0xff]  }
 0x4c3   :  { %3760 = vmatpush1.bf16.msra.mxu0 %v4894_v25  ;;  %v4933_v25 = vld [vmem:[#allocation11 + $0x380] ss:$8 sps:$4 sm:$0xff]  }
 0x4c4   :  { %3761 = vmatprep.subr.bf16.mxu0 %v4899_v26  ;;  %v4938_v26 = vld [vmem:[#allocation11 + $0x394] ss:$8 sps:$4 sm:$0xff]  }
 0x4c7   :  { %3762 = vmatpush1.bf16.msra.mxu0 %v4897_v51  ;;  %v4936_v51 = vld [vmem:[#allocation11 + $0x390] ss:$8 sps:$4 sm:$0xff]  }
 0x4c8   :  { %3763 = vmatprep.subr.bf16.mxu0 %v4902_v29  ;;  %v4941_v29 = vld [vmem:[#allocation11 + $0x3a4] ss:$8 sps:$4 sm:$0xff]  }
 0x4cb   :  { %3764 = vmatpush1.bf16.msra.mxu0 %v4900_v33  ;;  %v2752_v44 = vpop.f32.mrb[4].mxu0  ;;  %v4945_v33 = vld [vmem:[#allocation11 + $0x3c0] ss:$8 sps:$4 sm:$0xff]  }
 0x4cc   :  { %v4577_v45 = vadd.f32 %v2752_v44, %v1202_v37  ;;  %v2838_v46 = vpop.f32.mrb[20].mxu1  ;;  %v2754_v47 = vpop.f32.mrb[5].mxu0  ;;  %3765 = vmatprep.subr.bf16.mxu0 %v4905_v39  ;;  %v4948_v39 = vld [vmem:[#allocation11 + $0x3d0] ss:$8 sps:$4 sm:$0xff]  }
 0x4cd   :  { %v4581_v48 = vadd.f32 %v2838_v46, %v1210_v42  ;;  %v4578_v49 = vadd.f32 %v2754_v47, %v1206_v43  ;;  %v2840_v50 = vpop.f32.mrb[21].mxu1  ;;  %v2756_v34 = vpop.f32.mrb[6].mxu0  ;;  %v4954_v44 = vld [vmem:[#allocation11 + $0x3f0] ss:$8 sps:$4 sm:$0xff]  }
 0x4ce   :  { %v4582_v36 = vadd.f32 %v2840_v50, %v1214_v56  ;;  %v4579_v38 = vadd.f32 %v2756_v34, %v1202_v37  ;;  %v2842_v40 = vpop.f32.mrb[22].mxu1  ;;  %v2758_v41 = vpop.f32.mrb[7].mxu0  ;;  %v2851_v57 = vmax.f32 %v4577_v45, 0.0  ;;  %v4950_v37 = vld [vmem:[#allocation11 + $0x3d4] ss:$8 sps:$4 sm:$0xff]  }
 0x4cf   :  { %v4583_v52 = vadd.f32 %v2842_v40, %v1210_v42  ;;  %v4580_v54 = vadd.f32 %v2758_v41, %v1206_v43  ;;  %v2844_v55 = vpop.f32.mrb[23].mxu1  ;;  %3766 = vmatpush1.bf16.msra.mxu0 %v4903_v8  ;;  %v2853_v63 = vmax.f32 %v4581_v48, 0.0  ;;  %v2852_v0 = vmax.f32 %v4578_v49, 0.0  ;;  %v4953_v42 = vld [vmem:[#allocation11 + $0x3e4] ss:$8 sps:$4 sm:$0xff]   ;;  %v4969_v45 = vld [vmem:[#allocation13 + $0x70] sm:$0xff]  }
 0x4d0   :  { %v2859_v59 = vmax.f32 %v4579_v38, 0.0  ;;  %v4584_v60 = vadd.f32 %v2844_v55, %v1214_v56  ;;  %3767 = vmatprep.subr.bf16.mxu0 %v4908_v53  ;;  %v2854_v3 = vmax.f32 %v4582_v36, 0.0  ;;  %v4951_v43 = vld [vmem:[#allocation11 + $0x3e0] ss:$8 sps:$4 sm:$0xff]   ;;  %v4956_v56 = vld [vmem:[#allocation11 + $0x3f4] ss:$8 sps:$4 sm:$0xff]  }
 0x4d1   :  { %v2861_v1 = vmax.f32 %v4583_v52, 0.0  ;;  %v2860_v2 = vmax.f32 %v4580_v54, 0.0  ;;  %v4968_v8 = vld [vmem:[#allocation13 + $0x28] sm:$0xff]   ;;  %v4970_v46 = vld [vmem:[#allocation13 + $0x30] sm:$0xff]   ;;  %v4971_v47 = vld [vmem:[#allocation13 + $0x78] sm:$0xff]  }
 0x4d2   :  { %v2867_v9 = vpack.c.bf16 %v2859_v59, %v2851_v57  ;;  %v2862_v4 = vmax.f32 %v4584_v60, 0.0  ;;  %4538 = vmatpush3.bf16.msra.mxu1 %v4968_v8  ;;  %v4972_v53 = vld [vmem:[#allocation13 + $0x38] sm:$0xff]  }
 0x4d3   :  { %v5477_v5 = vpack.c.bf16 %v2861_v1, %v2853_v63  ;;  %v2868_v6 = vpack.c.bf16 %v2860_v2, %v2852_v0  ;;  %3768 = vmatpush1.bf16.msra.mxu0 %v4906_v35  ;;  %4539 = vmatprep.subr.bf16.mxu1 %v4969_v45  ;;  %v2999_v48 = vld [vmem:[%s5513_s10] sm:$0x3] }
 0x4d4   :  { %v2870_v10 = vpack.c.bf16 %v2862_v4, %v2854_v3  ;;  %3780 = vmatprep.subr.bf16.mxu0 %v4911_v62  ;;  %v3004_v49 = vrot.slane %v2999_v48, %v5374_v58  ;;  %v3008_v50 = vrot.slane %v2999_v48, %v5380_v61  ;;  %v4501_v58 = vld [vmem:[%s5515_s12] ss:$0 sm:$0xff] }
 0x4d5   :  { %3769 = vmatprep.mubr.bf16.mxu0 %v2868_v6 }
 0x4d6   :  { %3770 = vmatmul.mubr.bf16.vlgmr.msra.gmra.mrb[8].mxu0 %v2867_v9  ;;  %4540 = vmatpush3.bf16.msra.mxu1 %v4970_v46 }
 0x4d7   :  { %3781 = vmatpush1.bf16.msra.mxu0 %v4909_v7  ;;  %3812 = vmatprep.mubr.bf16.mxu0 %v2870_v10 }
 0x4d8   :  { %3782 = vmatprep.subr.bf16.mxu0 %v4914_v12  ;;  %4541 = vmatprep.subr.bf16.mxu1 %v4971_v47 }
 0x4da   :  { %4542 = vmatpush3.bf16.msra.mxu1 %v4972_v53 }
 0x4db   :  { %3783 = vmatpush1.bf16.msra.mxu0 %v4912_v11 }
 0x4dc   :  { %3784 = vmatprep.subr.bf16.mxu0 %v4917_v13 }
 0x4df   :  { %3785 = vmatpush1.bf16.msra.mxu0 %v4915_v14 }
 0x4e0   :  { %3786 = vmatprep.subr.bf16.mxu0 %v4920_v15 }
 0x4e3   :  { %3787 = vmatpush1.bf16.msra.mxu0 %v4918_v16 }
 0x4e4   :  { %3788 = vmatprep.subr.bf16.mxu0 %v4923_v17 }
 0x4e7   :  { %3789 = vmatpush1.bf16.msra.mxu0 %v4921_v18 }
 0x4e8   :  { %3790 = vmatprep.subr.bf16.mxu0 %v4926_v19 }
 0x4eb   :  { %3791 = vmatpush1.bf16.msra.mxu0 %v4924_v28 }
 0x4ec   :  { %3792 = vmatprep.subr.bf16.mxu0 %v4929_v20 }
 0x4ef   :  { %3793 = vmatpush1.bf16.msra.mxu0 %v4927_v21 }
 0x4f0   :  { %3794 = vmatprep.subr.bf16.mxu0 %v4932_v22 }
 0x4f3   :  { %3795 = vmatpush1.bf16.msra.mxu0 %v4930_v23 }
 0x4f4   :  { %3796 = vmatprep.subr.bf16.mxu0 %v4935_v24 }
 0x4f7   :  { %3797 = vmatpush1.bf16.msra.mxu0 %v4933_v25 }
 0x4f8   :  { %3798 = vmatprep.subr.bf16.mxu0 %v4938_v26 }
 0x4fb   :  { %3799 = vmatpush1.bf16.msra.mxu0 %v4936_v51 }
 0x4fc   :  { %3800 = vmatprep.subr.bf16.mxu0 %v4941_v29 }
 0x4ff   :  { %3801 = vmatpush1.bf16.msra.mxu0 %v4939_v30 }
 0x500   :  { %3802 = vmatprep.subr.bf16.mxu0 %v4944_v31 }
 0x503   :  { %3803 = vmatpush1.bf16.msra.mxu0 %v4942_v27 }
 0x504   :  { %3804 = vmatprep.subr.bf16.mxu0 %v4947_v32 }
 0x507   :  { %3805 = vmatpush1.bf16.msra.mxu0 %v4945_v33 }
 0x508   :  { %3806 = vmatprep.subr.bf16.mxu0 %v4950_v37 }
 0x50b   :  { %3807 = vmatpush1.bf16.msra.mxu0 %v4948_v39 }
 0x50c   :  { %3808 = vmatprep.subr.bf16.mxu0 %v4953_v42 }
 0x50f   :  { %3809 = vmatpush1.bf16.msra.mxu0 %v4951_v43 }
 0x510   :  { %3810 = vmatprep.subr.bf16.mxu0 %v4956_v56 }
 0x513   :  { %3811 = vmatpush1.bf16.msra.mxu0 %v4954_v44 }
 0x516   :  { %3813 = vmatmul.mubr.bf16.vlgmr.msra.gmra.mrb[8].mxu0 %v5477_v5 }
 0x5e9   :  { %v3814_v34 = vpop.f32.mrb[8].mxu0 }
 0x5ea   :  { %v4585_v36 = vadd.f32 %v3814_v34, %v3004_v49  ;;  %v3816_v38 = vpop.f32.mrb[9].mxu0 }
 0x5eb   :  { %v4586_v40 = vadd.f32 %v3816_v38, %v3008_v50  ;;  %v3818_v41 = vpop.f32.mrb[10].mxu0 }
 0x5ec   :  { %v4587_v52 = vadd.f32 %v3818_v41, %v3004_v49  ;;  %v3820_v54 = vpop.f32.mrb[11].mxu0  ;;  %v3823_v35 = vmax.f32 %v4585_v36, 0.0 }
 0x5ed   :  { %v4588_v55 = vadd.f32 %v3820_v54, %v3008_v50  ;;  %v3824_v59 = vmax.f32 %v4586_v40, 0.0 }
 0x5ee   :  { %v3825_v57 = vmax.f32 %v4587_v52, 0.0 }
 0x5ef   :  { %v3826_v60 = vmax.f32 %v4588_v55, 0.0 }
 0x5f0   :  { %v3827_v62 = vpack.c.bf16 %v3825_v57, %v3823_v35 }
 0x5f1   :  { %v3828_v63 = vpack.c.bf16 %v3826_v60, %v3824_v59 }
 0x5f3   :  { %3996 = vmatprep.mubr.bf16.mxu1 %v3828_v63 }
 0x5f4   :  { %3997 = vmatmul.mubr.bf16.vlgmr.msra.gmra.mrb[24].mxu1 %v3827_v62 }
 0x6c7   :  { %v4543_v0 = vpop.f32.mrb[24].mxu1 }
 0x6c8   :  { %v4544_v61 = vpop.f32.mrb[25].mxu1 }
 0x6c9   :  { %v4545_v1 = vadd.f32 %v4544_v61, %v4543_v0  ;;  %v4546_v2 = vpop.f32.mrb[26].mxu1 }
 0x6ca   :  { %v4547_v3 = vpop.f32.mrb[27].mxu1 }
 0x6cb   :  { %v3999_v9 = vadd.f32 %v4545_v1, %v4501_v58  ;;  %v4548_v4 = vadd.f32 %v4547_v3, %v4546_v2 }
 0x6cd   :  { %4005 = vst [vmem:[#allocation14] sm:$0xff] %v3999_v9  ;;  %v4002_v5 = vadd.f32 %v4548_v4, %v4501_v58 }
 0x6cf   :  { %4006 = vst [vmem:[#allocation14 + $0x8] sm:$0xff] %v4002_v5 }
 0x6d0   :  { %5138 = shalt.err (!%p5135_p4)
}
 0x6d1   :  { %s5139_s29 = scalar_lea.hbm %s5516_s13, 256 }
 0x6d2   :  { %p5140_p5 = scmp.ne.s32.totalorder %s5516_s13, %s5139_s29  ;;  %p5143_p6 = scmp.lt.u32.totalorder %s5139_s29, %s5516_s13 }
 0x6d4   :  { %p5145_p7 = pnand %p5143_p6, %p5140_p5 }
 0x6d6   :  { %5148 = shalt.err (!%p5145_p7)
}
 0x6d7   :  { %4018 = dma.vmem_to_hbm [thread:$0]  %s4013_s23, 256, %s5516_s13, [#allocation4], %s5167_s28, %s5167_s28, %s5168_s1  }
 0x6d8   :  { %5157 = dma.done.wait [#allocation4], 256  }
 0x6d9   :  { %5158 = vsyncadd [#allocation4], 4294967040 }
 0x6da   :  { %4022 = vsyncpa [#allocation3], 1 }
 0x6db   :  { %4023 = vsyncpa [#allocation6], 1 }
 0x6dc   :  { %4024 = vsyncpa [#allocation9], 1 }
 0x6dd   :  { %4025 = vsyncpa [#allocation12], 1 }
 0x6de   :  { %4026 = vsyncpa [#allocation4], 1 }

</bundles_post_ra>
